<compile_context>
chip_gen: v7x
topology: tpu7x:2x2x1
jax: 0.10.0
libtpu: 0.0.40
codegen_flags: <defaults>
</compile_context>

<pallas_src>
import functools

import jax
import jax.numpy as jnp
import numpy as np
from jax import lax
from jax.experimental import pallas as pl
from jax.experimental.pallas import tpu as pltpu


# ---------------------------------------------------------------------------
# Helpers
# ---------------------------------------------------------------------------
def _round_up(x, m):
    return ((x + m - 1) // m) * m


def _pick_tm(m, k_pad, oc_pad, tm_req, vmem_budget=12 * 1024 * 1024):
    """Row-tile selection with a scoped-VMEM guard.

    Footprint model: double-buffered bf16 patch / consumer / output streams,
    bf16 weight block, f32 shift.  Budget kept under v5e's 16 MiB default
    scoped VMEM so the patch stream stays double-buffered on every generation.
    """
    tm = max(8, min(_round_up(tm_req, 8), _round_up(m, 8)))

    def footprint(t):
        return 2 * (t * k_pad * 2          # patch tile (bf16)
                    + k_pad * oc_pad * 2   # weight block (bf16)
                    + oc_pad * 4           # shift (f32)
                    + t * oc_pad * 2       # consumer tile (bf16, SA path)
                    + t * oc_pad * 2)      # output tile (bf16)

    while tm > 8 and footprint(tm) > vmem_budget:
        tm //= 2
    return max(8, _round_up(tm, 8))


def _im2col_nhwc(x, kh, kw, stride, padding, dilation):
    """x: (N, H, W, C) -> patches (N*OH*OW, KH*KW*C), column order (kh, kw, c)
    which matches an OIHW weight transposed to (KH, KW, IC, OC)."""
    n, h, w, c = x.shape
    x_pad = jnp.pad(x, ((0, 0), (padding, padding), (padding, padding), (0, 0)))
    hp, wp = h + 2 * padding, w + 2 * padding
    eff_kh = dilation * (kh - 1) + 1
    eff_kw = dilation * (kw - 1) + 1
    oh = (hp - eff_kh) // stride + 1
    ow = (wp - eff_kw) // stride + 1
    cols = []
    for ih in range(kh):
        for iw in range(kw):
            h0, w0 = ih * dilation, iw * dilation
            cols.append(x_pad[:, h0:h0 + stride * (oh - 1) + 1:stride,
                              w0:w0 + stride * (ow - 1) + 1:stride, :])
    patches = jnp.stack(cols, axis=3)                 # (N, OH, OW, KH*KW, C)
    return patches.reshape(n * oh * ow, kh * kw * c), oh, ow


# ---------------------------------------------------------------------------
# Pallas kernel 1: batched  relu(P @ W + shift)   (Conv2d + BN + ReLU)
# ---------------------------------------------------------------------------
def _conv_bn_relu_kernel(p_ref, w_ref, s_ref, o_ref):
    acc = jnp.dot(p_ref[...], w_ref[...], preferred_element_type=jnp.float32)
    o_ref[...] = jnp.maximum(acc + s_ref[...], 0.0).astype(o_ref.dtype)


def fused_conv_bn_relu(patches, w_mats, shifts, *, tm=256):
    """patches: (B, M, K) bf16, w_mats: (B, K, OC) f32 (BN scale folded),
    shifts: (B, OC) f32.  Returns (B, M_pad, OC_pad) bf16; padded output
    channels are exactly zero (zero weight cols, zero shift, ReLU)."""
    b, m, k = patches.shape
    oc = w_mats.shape[-1]
    k_pad = _round_up(k, 128)
    oc_pad = _round_up(oc, 128)
    tm_eff = _pick_tm(m, k_pad, oc_pad, tm)
    m_pad = _round_up(m, tm_eff)

    p = jnp.pad(patches.astype(jnp.bfloat16),
                ((0, 0), (0, m_pad - m), (0, k_pad - k)))
    w = jnp.pad(w_mats, ((0, 0), (0, k_pad - k), (0, oc_pad - oc))
                ).astype(jnp.bfloat16)
    s = jnp.pad(shifts, ((0, 0), (0, oc_pad - oc))
                ).astype(jnp.float32)[:, None, :]

    cost = pl.CostEstimate(
        flops=2 * b * m_pad * k_pad * oc_pad,
        transcendentals=0,
        bytes_accessed=b * (m_pad * k_pad * 2 + k_pad * oc_pad * 2
                            + oc_pad * 4 + m_pad * oc_pad * 2),
    )
    return pl.pallas_call(
        _conv_bn_relu_kernel,
        out_shape=jax.ShapeDtypeStruct((b, m_pad, oc_pad), jnp.bfloat16),
        grid=(b, m_pad // tm_eff),
        in_specs=[
            pl.BlockSpec((None, tm_eff, k_pad), lambda bi, i: (bi, i, 0)),
            pl.BlockSpec((None, k_pad, oc_pad), lambda bi, i: (bi, 0, 0)),
            pl.BlockSpec((None, 1, oc_pad), lambda bi, i: (bi, 0, 0)),
        ],
        out_specs=pl.BlockSpec((None, tm_eff, oc_pad), lambda bi, i: (bi, i, 0)),
        compiler_params=pltpu.CompilerParams(
            dimension_semantics=("parallel", "parallel")),
        cost_estimate=cost,
    )(p, w, s)


# ---------------------------------------------------------------------------
# Pallas kernel 2: batched  x * sigmoid(P @ W) + x   (SpatialAttention + consumer)
# ---------------------------------------------------------------------------
def _sa_fused_kernel(p_ref, w_ref, x_ref, o_ref):
    # Weight column is replicated across all lanes, so `s` already carries the
    # attention score broadcast over the (padded) channel axis.
    s = jnp.dot(p_ref[...], w_ref[...], preferred_element_type=jnp.float32)
    a = pl.reciprocal(1.0 + jnp.exp(-s), approx=True)      # sigmoid on EUP
    x = x_ref[...].astype(jnp.float32)
    o_ref[...] = (x * a + x).astype(o_ref.dtype)


def fused_spatial_attention(patches, w_flat, x_feat, *, tm=256):
    """patches: (B, M, K) bf16 (K = kh*kw of the channel-max map),
    w_flat: (B, K) f32, x_feat: (B, M, Cp) bf16 with Cp a multiple of 128.
    Returns (B, M_pad, Cp) bf16 = x * sigmoid(conv(maxmap)) + x."""
    b, m, k = patches.shape
    cp = x_feat.shape[-1]
    k_pad = _round_up(k, 128)
    tm_eff = _pick_tm(m, k_pad, cp, tm)
    m_pad = _round_up(m, tm_eff)

    p = jnp.pad(patches.astype(jnp.bfloat16),
                ((0, 0), (0, m_pad - m), (0, k_pad - k)))
    x = jnp.pad(x_feat.astype(jnp.bfloat16), ((0, 0), (0, m_pad - m), (0, 0)))
    w = jnp.pad(w_flat, ((0, 0), (0, k_pad - k))).astype(jnp.bfloat16)
    w = jnp.broadcast_to(w[:, :, None], (b, k_pad, cp))     # replicate over lanes

    cost = pl.CostEstimate(
        flops=2 * b * m_pad * k_pad * cp + 2 * b * m_pad * cp,
        transcendentals=b * m_pad * cp,
        bytes_accessed=b * (m_pad * k_pad * 2 + k_pad * cp * 2
                            + 2 * m_pad * cp * 2),
    )
    return pl.pallas_call(
        _sa_fused_kernel,
        out_shape=jax.ShapeDtypeStruct((b, m_pad, cp), jnp.bfloat16),
        grid=(b, m_pad // tm_eff),
        in_specs=[
            pl.BlockSpec((None, tm_eff, k_pad), lambda bi, i: (bi, i, 0)),
            pl.BlockSpec((None, k_pad, cp), lambda bi, i: (bi, 0, 0)),
            pl.BlockSpec((None, tm_eff, cp), lambda bi, i: (bi, i, 0)),
        ],
        out_specs=pl.BlockSpec((None, tm_eff, cp), lambda bi, i: (bi, i, 0)),
        compiler_params=pltpu.CompilerParams(
            dimension_semantics=("parallel", "parallel")),
        cost_estimate=cost,
    )(p, w, x)


# ---------------------------------------------------------------------------
# Plain-JAX glue: bilinear resize, channel attention, forward pass.
# ---------------------------------------------------------------------------
def bilinear_resize_align_corners_nhwc(x, out_h, out_w):
    """F.interpolate(mode='bilinear', align_corners=True) on NHWC."""
    n, h, w, c = x.shape
    if h == out_h and w == out_w:
        return x
    ys = (jnp.arange(out_h, dtype=jnp.float32) * ((h - 1) / (out_h - 1))
          if out_h > 1 else jnp.zeros((out_h,), jnp.float32))
    xs = (jnp.arange(out_w, dtype=jnp.float32) * ((w - 1) / (out_w - 1))
          if out_w > 1 else jnp.zeros((out_w,), jnp.float32))
    y0 = jnp.clip(jnp.floor(ys).astype(jnp.int32), 0, h - 1)
    y1 = jnp.clip(y0 + 1, 0, h - 1)
    wy = (ys - y0.astype(jnp.float32))[None, :, None, None]
    x0 = jnp.clip(jnp.floor(xs).astype(jnp.int32), 0, w - 1)
    x1 = jnp.clip(x0 + 1, 0, w - 1)
    wx = (xs - x0.astype(jnp.float32))[None, None, :, None]
    top, bot = x[:, y0, :, :], x[:, y1, :, :]
    rows = top * (1.0 - wy) + bot * wy
    left, right = rows[:, :, x0, :], rows[:, :, x1, :]
    return left * (1.0 - wx) + right * wx


def channel_attention_nhwc(x, fc1_w, fc2_w):
    """ChannelAttention: adaptive max pool 1x1 -> 1x1 conv -> ReLU -> 1x1 conv
    -> sigmoid.  Operates on (N, C); tiny, so plain-JAX glue."""
    c = x.shape[-1]
    cr = fc1_w.shape[0]
    pooled = jnp.max(x, axis=(1, 2))                          # (N, C)
    h1 = jnp.maximum(pooled @ fc1_w.reshape(cr, c).T, 0.0)
    out = h1 @ fc2_w.reshape(c, cr).T
    return jax.nn.sigmoid(out)                                # (N, C)


def cfm_forward(rgb, srgb, params, *, tm=256, eps=1e-5):
    """CFM.forward(rgb, srgb).  rgb/srgb in NCHW; output NCHW f32."""
    n, c, h, w = rgb.shape

    # NHWC (channels-last, lane-dense) bf16 activations end-to-end.
    rgb_nhwc = jnp.transpose(rgb, (0, 2, 3, 1))                       # f32
    srgb_nhwc = jnp.transpose(srgb, (0, 2, 3, 1))
    srgb_up = bilinear_resize_align_corners_nhwc(srgb_nhwc, h, w)     # f32

    # --- Stage 1: both BasicConv2d blocks in one batched pallas_call -------
    x_pair = jnp.concatenate([rgb_nhwc, srgb_up], axis=0).astype(jnp.bfloat16)
    patches, oh, ow = _im2col_nhwc(x_pair, 3, 3, 1, 1, 1)             # bf16
    m = n * oh * ow
    patches = patches.reshape(2, m, 9 * c)

    def _fold(p):
        inv = 1.0 / jnp.sqrt(p["bn_var"] + eps)
        scale = p["bn_gamma"] * inv
        shift = p["bn_beta"] - p["bn_mean"] * scale
        w_mat = jnp.transpose(p["conv_w"], (2, 3, 1, 0)).reshape(9 * c, c)
        return w_mat * scale[None, :], shift

    w_rgb, s_rgb = _fold(params["rgb_"])
    w_srgb, s_srgb = _fold(params["srgb_"])
    w_mats = jnp.stack([w_rgb, w_srgb], axis=0)                       # (2, 9C, C)
    shifts = jnp.stack([s_rgb, s_srgb], axis=0)                       # (2, C)

    feat = fused_conv_bn_relu(patches, w_mats, shifts, tm=tm)  # (2, M_pad, Cp) bf16
    feat = feat[:, :m, :]            # branch 0 = rgb_, branch 1 = srgb_; pad lanes == 0

    # --- Stage 2: both SpatialAttention convs + their consumers, fused -----
    # rgb_sa  = rgb_  * sigmoid(conv7x7(max_c(srgb_))) + rgb_
    # srgb_sa = srgb_ * sigmoid(conv7x7(max_c(rgb_)))  + srgb_
    # Lane reduction for the channel max; zero-padded lanes are harmless
    # because the ReLU output is >= 0.
    maxmap = jnp.max(feat, axis=-1)                                   # (2, M) bf16
    maxmap = maxmap[::-1]                 # branch 0 uses srgb_ map, branch 1 uses rgb_ map
    maxmap = maxmap.reshape(2 * n, oh, ow, 1)
    sa_patches, _, _ = _im2col_nhwc(maxmap, 7, 7, 1, 3, 1)            # (2M, 49) bf16
    sa_patches = sa_patches.reshape(2, m, 49)
    sa_w = jnp.stack([params["srgb_sa_w"].reshape(49),
                      params["rgb_sa_w"].reshape(49)], axis=0)        # (2, 49)

    sa_out = fused_spatial_attention(sa_patches, sa_w, feat, tm=tm)   # (2, M_pad, Cp)

    # --- Stage 3 (tiny): channel attention + residual, plain-JAX glue ------
    fus = (sa_out[0, :m, :c] + sa_out[1, :m, :c]).astype(jnp.float32)
    fus = fus.reshape(n, h, w, c)
    ca = channel_attention_nhwc(fus, params["ca_fc1_w"], params["ca_fc2_w"])
    fus = fus * ca[:, None, None, :] + rgb_nhwc
    return jnp.transpose(fus, (0, 3, 1, 2))                           # back to NCHW


# ---------------------------------------------------------------------------
# Pure-JAX f32 reference (lax.conv) for validation.
# ---------------------------------------------------------------------------
def _ref_cfm(rgb, srgb, params, eps=1e-5):
    n, c, h, w = rgb.shape
    srgb_up = jnp.transpose(
        bilinear_resize_align_corners_nhwc(jnp.transpose(srgb, (0, 2, 3, 1)), h, w),
        (0, 3, 1, 2))

    def conv(x, wt, padding):
        return lax.conv_general_dilated(
            x, wt, (1, 1), ((padding, padding), (padding, padding)),
            dimension_numbers=("NCHW", "OIHW", "NCHW"))

    def bc(x, p):
        y = conv(x, p["conv_w"], 1)
        inv = 1.0 / jnp.sqrt(p["bn_var"] + eps)
        sc = (p["bn_gamma"] * inv)[None, :, None, None]
        sh = (p["bn_beta"] - p["bn_mean"] * p["bn_gamma"] * inv)[None, :, None, None]
        return jnp.maximum(y * sc + sh, 0.0)

    def sa(x, w_):
        m_ = jnp.max(x, axis=1, keepdims=True)
        return jax.nn.sigmoid(conv(m_, w_, 3))

    def ca(x, fc1_w, fc2_w):
        cr = fc1_w.shape[0]
        pooled = jnp.max(x, axis=(2, 3))
        h1 = jnp.maximum(pooled @ fc1_w.reshape(cr, c).T, 0.0)
        return jax.nn.sigmoid(h1 @ fc2_w.reshape(c, cr).T)[:, :, None, None]

    rgb_ = bc(rgb, params["rgb_"])
    srgb_ = bc(srgb_up, params["srgb_"])
    rgb_sa = rgb_ * sa(srgb_, params["srgb_sa_w"]) + rgb_
    srgb_sa = srgb_ * sa(rgb_, params["rgb_sa_w"]) + srgb_
    fus = rgb_sa + srgb_sa
    fus = fus * ca(fus, params["ca_fc1_w"], params["ca_fc2_w"])
    return fus + rgb


if __name__ == "__main__":
    key = jax.random.PRNGKey(0)
    keys = jax.random.split(key, 10)

    # in_channel must be >= 16 (ChannelAttention uses in_planes // 16).
    N, C = 2, 32
    H, W = 16, 16          # rgb spatial size
    SH, SW = 8, 8          # srgb at lower resolution (bilinearly upsampled)

    rgb = jax.random.normal(keys[0], (N, C, H, W), dtype=jnp.float32)
    srgb = jax.random.normal(keys[1], (N, C, SH, SW), dtype=jnp.float32)

    def bn_params(k):
        kg, kb, km, kv = jax.random.split(k, 4)
        return dict(
            bn_gamma=1.0 + 0.1 * jax.random.normal(kg, (C,), jnp.float32),
            bn_beta=0.1 * jax.random.normal(kb, (C,), jnp.float32),
            bn_mean=0.05 * jax.random.normal(km, (C,), jnp.float32),
            bn_var=jnp.abs(1.0 + 0.1 * jax.random.normal(kv, (C,), jnp.float32)),
        )

    params = {
        "rgb_": dict(conv_w=0.1 * jax.random.normal(keys[2], (C, C, 3, 3), jnp.float32),
                     **bn_params(keys[3])),
        "srgb_": dict(conv_w=0.1 * jax.random.normal(keys[4], (C, C, 3, 3), jnp.float32),
                      **bn_params(keys[5])),
        "rgb_sa_w": 0.1 * jax.random.normal(keys[6], (1, 1, 7, 7), jnp.float32),
        "srgb_sa_w": 0.1 * jax.random.normal(keys[7], (1, 1, 7, 7), jnp.float32),
        "ca_fc1_w": 0.1 * jax.random.normal(keys[8], (C // 16, C, 1, 1), jnp.float32),
        "ca_fc2_w": 0.1 * jax.random.normal(keys[9], (C, C // 16, 1, 1), jnp.float32),
    }

    fn = jax.jit(functools.partial(cfm_forward, tm=256))
    out = jax.block_until_ready(fn(rgb, srgb, params))

    ref = _ref_cfm(rgb, srgb, params)
    # bf16 activations / MXU operands (f32 accumulation) vs an f32 reference
    # -> relaxed tolerance.
    np.testing.assert_allclose(np.asarray(out), np.asarray(ref), atol=1e-1, rtol=1e-1)

    print("KERNEL_OK")
</pallas_src>

<mosaic_0001>
module attributes {stable_mosaic.version = 11 : i64} {
  func.func @_conv_bn_relu_kernel(%arg0: i32, %arg1: i32, %arg2: memref<1x256x384xbf16, #tpu.memory_space<vmem>>, %arg3: memref<1x384x128xbf16, #tpu.memory_space<vmem>>, %arg4: memref<1x1x128xf32, #tpu.memory_space<vmem>>, %arg5: memref<1x256x128xbf16, #tpu.memory_space<vmem>>) attributes {dimension_semantics = [#tpu.dimension_semantics<parallel>, #tpu.dimension_semantics<parallel>], iteration_bounds = array<i64: 2, 2>, scalar_prefetch = 0 : i64, scratch_operands = 0 : i64, tpu.core_type = #tpu.core_type<tc>, window_params = [{transform_indices = @transform_0, window_bounds = array<i64: 1, 256, 384>}, {transform_indices = @transform_1, window_bounds = array<i64: 1, 384, 128>}, {transform_indices = @transform_2, window_bounds = array<i64: 1, 1, 128>}, {transform_indices = @transform_3, window_bounds = array<i64: 1, 256, 128>}]} {
    %c0 = arith.constant 0 : index
    %c0_0 = arith.constant 0 : index
    %c0_1 = arith.constant 0 : index
    %0 = vector.load %arg2[%c0, %c0_0, %c0_1] : memref<1x256x384xbf16, #tpu.memory_space<vmem>>, vector<1x256x384xbf16>
    %1 = vector.shape_cast %0 : vector<1x256x384xbf16> to vector<256x384xbf16>
    %c0_2 = arith.constant 0 : index
    %c0_3 = arith.constant 0 : index
    %c0_4 = arith.constant 0 : index
    %2 = vector.load %arg3[%c0_2, %c0_3, %c0_4] : memref<1x384x128xbf16, #tpu.memory_space<vmem>>, vector<1x384x128xbf16>
    %3 = vector.shape_cast %2 : vector<1x384x128xbf16> to vector<384x128xbf16>
    %cst = arith.constant dense<0.000000e+00> : vector<256x128xf32>
    %4 = tpu.matmul %1, %3, %cst {dimension_numbers = #tpu.dot_dimension_numbers<[1], [0], [0], [1], [0, 0, 1, 1], [], []>} : vector<256x384xbf16>, vector<384x128xbf16>, vector<256x128xf32> -> vector<256x128xf32>
    %c0_5 = arith.constant 0 : index
    %c0_6 = arith.constant 0 : index
    %c0_7 = arith.constant 0 : index
    %5 = vector.load %arg4[%c0_5, %c0_6, %c0_7] : memref<1x1x128xf32, #tpu.memory_space<vmem>>, vector<1x1x128xf32>
    %6 = vector.shape_cast %5 : vector<1x1x128xf32> to vector<1x128xf32>
    %7 = vector.broadcast %6 : vector<1x128xf32> to vector<256x128xf32>
    %8 = arith.addf %4, %7 : vector<256x128xf32>
    %cst_8 = arith.constant 0.000000e+00 : f32
    %9 = vector.broadcast %cst_8 : f32 to vector<256x128xf32>
    %10 = arith.maximumf %8, %9 : vector<256x128xf32>
    %11 = arith.truncf %10 : vector<256x128xf32> to vector<256x128xbf16>
    %c0_9 = arith.constant 0 : index
    %c0_10 = arith.constant 0 : index
    %c0_11 = arith.constant 0 : index
    %12 = vector.load %arg5[%c0_9, %c0_10, %c0_11] : memref<1x256x128xbf16, #tpu.memory_space<vmem>>, vector<1x256x128xbf16>
    %13 = vector.shape_cast %12 : vector<1x256x128xbf16> to vector<256x128xbf16>
    %14 = vector.shape_cast %11 : vector<256x128xbf16> to vector<1x256x128xbf16>
    tpu.vector_store %arg5[%c0_9, %c0_10, %c0_11], %14 {strides = array<i32>} : memref<1x256x128xbf16, #tpu.memory_space<vmem>>, vector<1x256x128xbf16>,
    return
  }
  func.func @transform_0(%arg0: i32, %arg1: i32) -> (i32, i32, i32) {
    %c0_i32 = arith.constant 0 : i32
    %c0_i32_0 = arith.constant 0 : i32
    return %arg0, %arg1, %c0_i32 : i32, i32, i32
  }
  func.func @transform_1(%arg0: i32, %arg1: i32) -> (i32, i32, i32) {
    %c0_i32 = arith.constant 0 : i32
    %c0_i32_0 = arith.constant 0 : i32
    %c0_i32_1 = arith.constant 0 : i32
    return %arg0, %c0_i32, %c0_i32_0 : i32, i32, i32
  }
  func.func @transform_2(%arg0: i32, %arg1: i32) -> (i32, i32, i32) {
    %c0_i32 = arith.constant 0 : i32
    %c0_i32_0 = arith.constant 0 : i32
    %c0_i32_1 = arith.constant 0 : i32
    return %arg0, %c0_i32, %c0_i32_0 : i32, i32, i32
  }
  func.func @transform_3(%arg0: i32, %arg1: i32) -> (i32, i32, i32) {
    %c0_i32 = arith.constant 0 : i32
    %c0_i32_0 = arith.constant 0 : i32
    return %arg0, %arg1, %c0_i32 : i32, i32, i32
  }
}

module attributes {stable_mosaic.version = 11 : i64} {
  func.func @_sa_fused_kernel(%arg0: i32, %arg1: i32, %arg2: memref<1x256x128xbf16, #tpu.memory_space<vmem>>, %arg3: memref<1x128x128xbf16, #tpu.memory_space<vmem>>, %arg4: memref<1x256x128xbf16, #tpu.memory_space<vmem>>, %arg5: memref<1x256x128xbf16, #tpu.memory_space<vmem>>) attributes {dimension_semantics = [#tpu.dimension_semantics<parallel>, #tpu.dimension_semantics<parallel>], iteration_bounds = array<i64: 2, 2>, scalar_prefetch = 0 : i64, scratch_operands = 0 : i64, tpu.core_type = #tpu.core_type<tc>, window_params = [{transform_indices = @transform_0, window_bounds = array<i64: 1, 256, 128>}, {transform_indices = @transform_1, window_bounds = array<i64: 1, 128, 128>}, {transform_indices = @transform_2, window_bounds = array<i64: 1, 256, 128>}, {transform_indices = @transform_3, window_bounds = array<i64: 1, 256, 128>}]} {
    %c0 = arith.constant 0 : index
    %c0_0 = arith.constant 0 : index
    %c0_1 = arith.constant 0 : index
    %0 = vector.load %arg2[%c0, %c0_0, %c0_1] : memref<1x256x128xbf16, #tpu.memory_space<vmem>>, vector<1x256x128xbf16>
    %1 = vector.shape_cast %0 : vector<1x256x128xbf16> to vector<256x128xbf16>
    %c0_2 = arith.constant 0 : index
    %c0_3 = arith.constant 0 : index
    %c0_4 = arith.constant 0 : index
    %2 = vector.load %arg3[%c0_2, %c0_3, %c0_4] : memref<1x128x128xbf16, #tpu.memory_space<vmem>>, vector<1x128x128xbf16>
    %3 = vector.shape_cast %2 : vector<1x128x128xbf16> to vector<128x128xbf16>
    %cst = arith.constant dense<0.000000e+00> : vector<256x128xf32>
    %4 = tpu.matmul %1, %3, %cst {dimension_numbers = #tpu.dot_dimension_numbers<[1], [0], [0], [1], [0, 0, 1, 1], [], []>} : vector<256x128xbf16>, vector<128x128xbf16>, vector<256x128xf32> -> vector<256x128xf32>
    %cst_5 = arith.constant 0.000000e+00 : f32
    %5 = vector.broadcast %cst_5 : f32 to vector<256x128xf32>
    %6 = arith.subf %5, %4 : vector<256x128xf32>
    %7 = math.exp %6 : vector<256x128xf32>
    %cst_6 = arith.constant 1.000000e+00 : f32
    %8 = vector.broadcast %cst_6 : f32 to vector<256x128xf32>
    %9 = arith.addf %8, %7 : vector<256x128xf32>
    %10 = tpu.reciprocal %9 {approx = true} : vector<256x128xf32> -> vector<256x128xf32>
    %c0_7 = arith.constant 0 : index
    %c0_8 = arith.constant 0 : index
    %c0_9 = arith.constant 0 : index
    %11 = vector.load %arg4[%c0_7, %c0_8, %c0_9] : memref<1x256x128xbf16, #tpu.memory_space<vmem>>, vector<1x256x128xbf16>
    %12 = vector.shape_cast %11 : vector<1x256x128xbf16> to vector<256x128xbf16>
    %13 = arith.extf %12 : vector<256x128xbf16> to vector<256x128xf32>
    %14 = arith.mulf %13, %10 : vector<256x128xf32>
    %15 = arith.addf %14, %13 : vector<256x128xf32>
    %16 = arith.truncf %15 : vector<256x128xf32> to vector<256x128xbf16>
    %c0_10 = arith.constant 0 : index
    %c0_11 = arith.constant 0 : index
    %c0_12 = arith.constant 0 : index
    %17 = vector.load %arg5[%c0_10, %c0_11, %c0_12] : memref<1x256x128xbf16, #tpu.memory_space<vmem>>, vector<1x256x128xbf16>
    %18 = vector.shape_cast %17 : vector<1x256x128xbf16> to vector<256x128xbf16>
    %19 = vector.shape_cast %16 : vector<256x128xbf16> to vector<1x256x128xbf16>
    tpu.vector_store %arg5[%c0_10, %c0_11, %c0_12], %19 {strides = array<i32>} : memref<1x256x128xbf16, #tpu.memory_space<vmem>>, vector<1x256x128xbf16>,
    return
  }
  func.func @transform_0(%arg0: i32, %arg1: i32) -> (i32, i32, i32) {
    %c0_i32 = arith.constant 0 : i32
    %c0_i32_0 = arith.constant 0 : i32
    return %arg0, %arg1, %c0_i32 : i32, i32, i32
  }
  func.func @transform_1(%arg0: i32, %arg1: i32) -> (i32, i32, i32) {
    %c0_i32 = arith.constant 0 : i32
    %c0_i32_0 = arith.constant 0 : i32
    %c0_i32_1 = arith.constant 0 : i32
    return %arg0, %c0_i32, %c0_i32_0 : i32, i32, i32
  }
  func.func @transform_2(%arg0: i32, %arg1: i32) -> (i32, i32, i32) {
    %c0_i32 = arith.constant 0 : i32
    %c0_i32_0 = arith.constant 0 : i32
    return %arg0, %arg1, %c0_i32 : i32, i32, i32
  }
  func.func @transform_3(%arg0: i32, %arg1: i32) -> (i32, i32, i32) {
    %c0_i32 = arith.constant 0 : i32
    %c0_i32_0 = arith.constant 0 : i32
    return %arg0, %arg1, %c0_i32 : i32, i32, i32
  }
}

</mosaic_0001>

<bundles_post_ra>
// kernel: cfm_forward.2
= control target key start
LH: loop header
LB: loop body
LE: loop exit
PB: predicated region body
PF: predicated region fallthrough
CT: control target
= control target key end

     0   :  { %s2030_s12 = smov 0   ;;  %s2032_s13 = smov 0   ;;  %s2254_s0 = inlined_call_operand.vmem [shape: bf16[2,512,384], index: 0, kind: input, shape index: {}]   ;;  %s2255_s1 = inlined_call_operand.vmem [shape: bf16[2,384,128], index: 1, kind: input, shape index: {}]   ;;  %s2256_s2 = inlined_call_operand.vmem [shape: f32[2,1,128], index: 2, kind: input, shape index: {}]   ;;  %s2257_s3 = inlined_call_operand.vmem [shape: bf16[2,512,128], index: 3, kind: output, shape index: {}]  }
   0x1   :  { %s2034_s14 = smov 0   ;;  %s2036_s15 = smov 0  }
   0x2   :  { %s2038_s16 = smov 0  }
   0x3 LB: > { %s22_s17 = sadd.s32 1, %s2000_s14  ;;  %s25_s18 = sadd.s32 1, %s2004_s15  ;;  %s2008_s16 = sphi %s2038_s16, %s13_s16   ;;  %s2004_s15 = sphi %s2036_s15, %s2261_s15   ;;  %s2000_s14 = sphi %s2034_s14, %s2260_s14   ;;  %s1996_s13 = sphi %s2032_s13, %s2259_s13   ;;  %s1992_s12 = sphi %s2030_s12, %s2258_s12  }
   0x4   : > { %p23_p0 = scmp.ge.s32.totalorder %s22_s17, 2  ;;  %p1399_p1 = scmp.ge.s32.totalorder %s2008_s16, 1 }
   0x5   : > { %p177_p2 = scmp.lt.s32.totalorder %s2008_s16, 5 }
   0x6   : > { %s2263_s17 = smov (%p23_p0, %s22_s17), 0  ;;  %s2265_s18 = smov (!%p23_p0, %s25_s18), %s2004_s15 }
   0x7   : > { %p178_p3 = pnand %p1399_p1, %p177_p2  ;;  %p27_p4 = scmp.ge.s32.totalorder %s2265_s18, 2 }
   0x8   : > { %s1400_s19 = sshll.u32 (!%p178_p3), %s1992_s12, 5  ;;  %p219_p5 = scmp.lt.s32.totalorder (!%p178_p3), %s1996_s13, 1 }
   0x9   : > { %s2267_s18 = smov (%p27_p4, %s2265_s18), 0  ;;  %181 = sbr.rel (%p178_p3) target bundleno = 367 (0x16f), region = 32 }
   0xa   : > { %p221_p6 = scmp.lt.s32.totalorder (!%p178_p3), %s1400_s19, 63 }
  0x10   : > { %s2269_s13 = smov (!%p219_p5, %s1996_s13), 1  ;;  %s2271_s19 = smov (!%p221_p6, %s1400_s19), 63 }
  0x11   : > { %s1841_s20 = smul.u32 192, %s2269_s13  ;;  %s236_s5 = scalar_lea.vmem %s2256_s2, %s2269_s13 }
  0x12   : > { %s1840_s24 = smul.u32 3, %s2271_s19  ;;  %s1404_s6 = sshll.u32 %s2269_s13, 6 }
  0x13   : > { %s2066_s23 = scalar_lea.vmem %s2255_s1, %s1841_s20  ;;  %s243_s7 = sadd.s32 %s1404_s6, %s2271_s19 }
  0x14   : > { %v1882_v0 = vld [vmem:[%s2066_s23 + $0x40] sm:$0xff]   ;;  %v1884_v2 = vld [vmem:[%s2066_s23 + $0x48] sm:$0xff]   ;;  %v1886_v4 = vld [vmem:[%s2066_s23 + $0x50] sm:$0xff]   ;;  %s225_s25 = sadd.s32 %s1841_s20, %s1840_s24  ;;  %s1405_s8 = sshll.u32 %s243_s7, 2 }
  0x15   : > { %v1883_v1 = vld [vmem:[%s2066_s23] sm:$0xff]   ;;  %1640 = vmatprep.subr.bf16.mxu0 %v1882_v0  ;;  %1824 = vmatprep.subr.bf16.mxu1 %v1882_v0  ;;  %v1885_v3 = vld [vmem:[%s2066_s23 + $0x8] sm:$0xff]   ;;  %v1887_v5 = vld [vmem:[%s2066_s23 + $0x10] sm:$0xff]   ;;  %s1401_s26 = sshll.u32 %s225_s25, 2  ;;  %s2179_s11 = scalar_lea.vmem %s2257_s3, %s1405_s8 }
  0x16   : > { %1641 = vmatpush3.bf16.msra.mxu0 %v1883_v1  ;;  %1832 = vmatpush3.bf16.msra.mxu1 %v1883_v1  ;;  %v1888_v6 = vld [vmem:[%s2066_s23 + $0x58] sm:$0xff]   ;;  %v1890_v8 = vld [vmem:[%s2066_s23 + $0x60] sm:$0xff]   ;;  %s2083_s29 = scalar_lea.vmem %s2254_s0, %s1401_s26  ;;  %v1892_v10 = vld [vmem:[%s2066_s23 + $0x68] sm:$0xff]  }
  0x17   : > { %1642 = vmatprep.subr.bf16.mxu0 %v1884_v2  ;;  %1825 = vmatprep.subr.bf16.mxu1 %v1884_v2  ;;  %v1889_v7 = vld [vmem:[%s2066_s23 + $0x18] sm:$0xff]   ;;  %v1891_v9 = vld [vmem:[%s2066_s23 + $0x20] sm:$0xff]   ;;  %v1893_v13 = vld [vmem:[%s2066_s23 + $0x28] sm:$0xff]  }
  0x18   : > { %v1900_v11 = vld [vmem:[%s2083_s29 + $0x4] ss:$12 sps:$4 sm:$0xff]   ;;  %v1896_v16 = vld [vmem:[%s2066_s23 + $0x78] sm:$0xff]   ;;  %v1898_v19 = vld [vmem:[%s2083_s29] ss:$12 sps:$4 sm:$0xff]  }
  0x19   : > { %v1903_v12 = vld [vmem:[%s2083_s29 + $0x124] ss:$12 sps:$4 sm:$0xff]   ;;  %799 = vmatprep.mubr.bf16.mxu0 %v1900_v11  ;;  %v1897_v17 = vld [vmem:[%s2066_s23 + $0x38] sm:$0xff]   ;;  %v1901_v20 = vld [vmem:[%s2083_s29 + $0x120] ss:$12 sps:$4 sm:$0xff]  }
  0x1a   : > { %1643 = vmatpush3.bf16.msra.mxu0 %v1885_v3  ;;  %1833 = vmatpush3.bf16.msra.mxu1 %v1885_v3  ;;  %v1894_v14 = vld [vmem:[%s2066_s23 + $0x70] sm:$0xff]   ;;  %v1904_v18 = vld [vmem:[%s2066_s23 + $0x80] sm:$0xff]   ;;  %v1906_v21 = vld [vmem:[%s2083_s29 + $0x1c] ss:$12 sps:$4 sm:$0xff]  }
  0x1b   : > { %1644 = vmatprep.subr.bf16.mxu0 %v1886_v4  ;;  %1826 = vmatprep.subr.bf16.mxu1 %v1886_v4  ;;  %v1895_v15 = vld [vmem:[%s2066_s23 + $0x30] sm:$0xff]   ;;  %v1905_v22 = vld [vmem:[%s2066_s23 + $0x88] sm:$0xff]   ;;  %v1910_v24 = vld [vmem:[%s2083_s29 + $0x18] ss:$12 sps:$4 sm:$0xff]  }
  0x1c   : > { %895 = vmatprep.mubr.bf16.mxu1 %v1903_v12  ;;  %v1908_v23 = vld [vmem:[%s2083_s29 + $0x13c] ss:$12 sps:$4 sm:$0xff]   ;;  %v1912_v25 = vld [vmem:[%s2066_s23 + $0x90] sm:$0xff]   ;;  %v1911_v26 = vld [vmem:[%s2083_s29 + $0x138] ss:$12 sps:$4 sm:$0xff]  }
  0x1d   : > { %v1913_v27 = vld [vmem:[%s2066_s23 + $0x98] sm:$0xff]   ;;  %v1914_v28 = vld [vmem:[%s2083_s29 + $0x34] ss:$12 sps:$4 sm:$0xff]   ;;  %v1921_v33 = vld [vmem:[%s2066_s23 + $0xa8] sm:$0xff]  }
  0x1e   : > { %1645 = vmatpush3.bf16.msra.mxu0 %v1887_v5  ;;  %1834 = vmatpush3.bf16.msra.mxu1 %v1887_v5  ;;  %v1916_v29 = vld [vmem:[%s2083_s29 + $0x154] ss:$12 sps:$4 sm:$0xff]   ;;  %v1918_v31 = vld [vmem:[%s2083_s29 + $0x30] ss:$12 sps:$4 sm:$0xff]   ;;  %v1922_v34 = vld [vmem:[%s2083_s29 + $0x4c] ss:$12 sps:$4 sm:$0xff]  }
  0x1f   : > { %1646 = vmatprep.subr.bf16.mxu0 %v1888_v6  ;;  %1827 = vmatprep.subr.bf16.mxu1 %v1888_v6  ;;  %v1920_v30 = vld [vmem:[%s2066_s23 + $0xa0] sm:$0xff]   ;;  %v1919_v32 = vld [vmem:[%s2083_s29 + $0x150] ss:$12 sps:$4 sm:$0xff]   ;;  %v1924_v35 = vld [vmem:[%s2083_s29 + $0x16c] ss:$12 sps:$4 sm:$0xff]  }
  0x20   : > { %v1928_v36 = vld [vmem:[%s2066_s23 + $0xb0] sm:$0xff]   ;;  %v1929_v40 = vld [vmem:[%s2066_s23 + $0xb8] sm:$0xff]   ;;  %v1933_v42 = vld [vmem:[%s2083_s29 + $0x60] ss:$12 sps:$4 sm:$0xff]  }
  0x21   : > { %v1926_v37 = vld [vmem:[%s2083_s29 + $0x48] ss:$12 sps:$4 sm:$0xff]   ;;  %v1930_v39 = vld [vmem:[%s2083_s29 + $0x64] ss:$12 sps:$4 sm:$0xff]   ;;  %v1934_v43 = vld [vmem:[%s2083_s29 + $0x20] ss:$12 sps:$4 sm:$0xff]  }
  0x22   : > { %1647 = vmatpush3.bf16.msra.mxu0 %v1889_v7  ;;  %1835 = vmatpush3.bf16.msra.mxu1 %v1889_v7  ;;  %v1927_v38 = vld [vmem:[%s2083_s29 + $0x168] ss:$12 sps:$4 sm:$0xff]   ;;  %v1937_v45 = vld [vmem:[%s2083_s29 + $0x38] ss:$12 sps:$4 sm:$0xff]   ;;  %v1939_v47 = vld [vmem:[%s2083_s29 + $0x50] ss:$12 sps:$4 sm:$0xff]  }
  0x23   : > { %1648 = vmatprep.subr.bf16.mxu0 %v1890_v8  ;;  %1828 = vmatprep.subr.bf16.mxu1 %v1890_v8  ;;  %v1932_v41 = vld [vmem:[%s2083_s29 + $0x8] ss:$12 sps:$4 sm:$0xff]   ;;  %v1938_v46 = vld [vmem:[%s2083_s29 + $0x78] ss:$12 sps:$4 sm:$0xff]   ;;  %v1943_v50 = vld [vmem:[%s2083_s29 + $0x90] ss:$12 sps:$4 sm:$0xff]  }
  0x24   : > { %v1935_v44 = vld [vmem:[%s2083_s29 + $0x7c] ss:$12 sps:$4 sm:$0xff]   ;;  %v1940_v48 = vld [vmem:[%s2083_s29 + $0x94] ss:$12 sps:$4 sm:$0xff]   ;;  %v1945_v52 = vld [vmem:[%s2083_s29 + $0xac] ss:$12 sps:$4 sm:$0xff]  }
  0x25   : > { %v1942_v49 = vld [vmem:[%s2083_s29 + $0x68] ss:$12 sps:$4 sm:$0xff]   ;;  %v1944_v51 = vld [vmem:[%s2083_s29 + $0x80] ss:$12 sps:$4 sm:$0xff]   ;;  %v1947_v53 = vld [vmem:[%s2083_s29 + $0x98] ss:$12 sps:$4 sm:$0xff]  }
  0x26   : > { %1649 = vmatpush3.bf16.msra.mxu0 %v1891_v9  ;;  %1836 = vmatpush3.bf16.msra.mxu1 %v1891_v9  ;;  %v1948_v54 = vld [vmem:[%s2083_s29 + $0xa8] ss:$12 sps:$4 sm:$0xff]   ;;  %v1949_v55 = vld [vmem:[%s2083_s29 + $0xb0] ss:$12 sps:$4 sm:$0xff]   ;;  %v1953_v58 = vld [vmem:[%s2083_s29 + $0xc0] ss:$12 sps:$4 sm:$0xff]  }
  0x27   : > { %1650 = vmatprep.subr.bf16.mxu0 %v1892_v10  ;;  %1829 = vmatprep.subr.bf16.mxu1 %v1892_v10  ;;  %v1950_v56 = vld [vmem:[%s2083_s29 + $0xc4] ss:$12 sps:$4 sm:$0xff]   ;;  %v1952_v57 = vld [vmem:[%s2083_s29 + $0xc8] ss:$12 sps:$4 sm:$0xff]   ;;  %v1954_v59 = vld [vmem:[%s2083_s29 + $0xe0] ss:$12 sps:$4 sm:$0xff]  }
  0x28   : > { %v1955_v60 = vld [vmem:[%s2083_s29 + $0xdc] ss:$12 sps:$4 sm:$0xff]   ;;  %v1957_v61 = vld [vmem:[%s2083_s29 + $0xf8] ss:$12 sps:$4 sm:$0xff]   ;;  %v1960_v0 = vld [vmem:[%s2083_s29 + $0xf4] ss:$12 sps:$4 sm:$0xff]  }
  0x29   : > { %v1958_v62 = vld [vmem:[%s2083_s29 + $0xd8] ss:$12 sps:$4 sm:$0xff]   ;;  %v1959_v63 = vld [vmem:[%s2083_s29 + $0x110] ss:$12 sps:$4 sm:$0xff]   ;;  %v1962_v1 = vld [vmem:[%s2083_s29 + $0x128] ss:$12 sps:$4 sm:$0xff]  }
  0x2a   : > { %1651 = vmatpush3.bf16.msra.mxu0 %v1893_v13  ;;  %1837 = vmatpush3.bf16.msra.mxu1 %v1893_v13  ;;  %v1963_v2 = vld [vmem:[%s2083_s29 + $0xf0] ss:$12 sps:$4 sm:$0xff]   ;;  %v1964_v3 = vld [vmem:[%s2083_s29 + $0x140] ss:$12 sps:$4 sm:$0xff]   ;;  %v1967_v5 = vld [vmem:[%s2083_s29 + $0x158] ss:$12 sps:$4 sm:$0xff]  }
  0x2b   : > { %1652 = vmatprep.subr.bf16.mxu0 %v1894_v14  ;;  %1830 = vmatprep.subr.bf16.mxu1 %v1894_v14  ;;  %v1965_v4 = vld [vmem:[%s2083_s29 + $0x10c] ss:$12 sps:$4 sm:$0xff]   ;;  %v1968_v6 = vld [vmem:[%s2083_s29 + $0x108] ss:$12 sps:$4 sm:$0xff]   ;;  %v1969_v7 = vld [vmem:[%s2083_s29 + $0x170] ss:$12 sps:$4 sm:$0xff]  }
  0x2e   : > { %1653 = vmatpush3.bf16.msra.mxu0 %v1895_v15  ;;  %1838 = vmatpush3.bf16.msra.mxu1 %v1895_v15 }
  0x2f   : > { %1654 = vmatprep.subr.bf16.mxu0 %v1896_v16  ;;  %1831 = vmatprep.subr.bf16.mxu1 %v1896_v16 }
  0x32   : > { %1655 = vmatpush3.bf16.msra.mxu0 %v1897_v17  ;;  %1839 = vmatpush3.bf16.msra.mxu1 %v1897_v17 }
  0x33   : > { %1776 = vmatprep.subr.bf16.mxu1 %v1904_v18 }
  0x35   : > { %800 = vmatmul.mubr.bf16.vlgmr.msra.gmra.mrb[0].mxu0 %v1898_v19  ;;  %896 = vmatmul.mubr.bf16.vlgmr.msra.gmra.mrb[0].mxu1 %v1901_v20 }
  0x36   : > { %1777 = vmatpush3.bf16.msra.mxu1 %v1904_v18  ;;  %807 = vmatprep.mubr.bf16.mxu0 %v1906_v21 }
  0x37   : > { %1778 = vmatprep.subr.bf16.mxu1 %v1905_v22  ;;  %903 = vmatprep.mubr.bf16.mxu1 %v1908_v23 }
  0x3a   : > { %1779 = vmatpush3.bf16.msra.mxu1 %v1905_v22 }
  0x3b   : > { %1780 = vmatprep.subr.bf16.mxu1 %v1912_v25 }
  0x3d   : > { %808 = vmatmul.mubr.bf16.gmra.mrb[4].mxu0 %v1910_v24  ;;  %904 = vmatmul.mubr.bf16.gmra.mrb[4].mxu1 %v1911_v26 }
  0x3e   : > { %1781 = vmatpush3.bf16.msra.mxu1 %v1912_v25  ;;  %815 = vmatprep.mubr.bf16.mxu0 %v1914_v28 }
  0x3f   : > { %1782 = vmatprep.subr.bf16.mxu1 %v1913_v27  ;;  %911 = vmatprep.mubr.bf16.mxu1 %v1916_v29 }
  0x42   : > { %1783 = vmatpush3.bf16.msra.mxu1 %v1913_v27 }
  0x43   : > { %1784 = vmatprep.subr.bf16.mxu1 %v1920_v30 }
  0x45   : > { %816 = vmatmul.mubr.bf16.gmra.mrb[8].mxu0 %v1918_v31  ;;  %912 = vmatmul.mubr.bf16.gmra.mrb[8].mxu1 %v1919_v32 }
  0x46   : > { %1785 = vmatpush3.bf16.msra.mxu1 %v1920_v30  ;;  %823 = vmatprep.mubr.bf16.mxu0 %v1922_v34 }
  0x47   : > { %1786 = vmatprep.subr.bf16.mxu1 %v1921_v33  ;;  %919 = vmatprep.mubr.bf16.mxu1 %v1924_v35 }
  0x4a   : > { %1787 = vmatpush3.bf16.msra.mxu1 %v1921_v33 }
  0x4b   : > { %1788 = vmatprep.subr.bf16.mxu1 %v1928_v36 }
  0x4d   : > { %824 = vmatmul.mubr.bf16.gmra.mrb[12].mxu0 %v1926_v37  ;;  %920 = vmatmul.mubr.bf16.gmra.mrb[12].mxu1 %v1927_v38 }
  0x4e   : > { %1789 = vmatpush3.bf16.msra.mxu1 %v1928_v36  ;;  %831 = vmatprep.mubr.bf16.mxu0 %v1930_v39 }
  0x4f   : > { %1790 = vmatprep.subr.bf16.mxu1 %v1929_v40  ;;  %1792 = vmatprep.mubr.bf16.mxu1 %v1932_v41 }
  0x52   : > { %1791 = vmatpush3.bf16.msra.mxu1 %v1929_v40 }
  0x55   : > { %832 = vmatmul.mubr.bf16.gmra.mrb[16].mxu0 %v1933_v42  ;;  %1793 = vmatmul.mubr.bf16.vlgmr.msra.gmra.mrb[16].mxu1 %v1934_v43 }
  0x56   : > { %839 = vmatprep.mubr.bf16.mxu0 %v1935_v44  ;;  %1796 = vmatprep.mubr.bf16.mxu1 %v1937_v45 }
  0x5d   : > { %840 = vmatmul.mubr.bf16.gmra.mrb[20].mxu0 %v1938_v46  ;;  %1797 = vmatmul.mubr.bf16.gmra.mrb[20].mxu1 %v1939_v47 }
  0x5e   : > { %847 = vmatprep.mubr.bf16.mxu0 %v1940_v48  ;;  %1800 = vmatprep.mubr.bf16.mxu1 %v1942_v49 }
  0x65   : > { %848 = vmatmul.mubr.bf16.gmra.mrb[24].mxu0 %v1943_v50  ;;  %1801 = vmatmul.mubr.bf16.gmra.mrb[24].mxu1 %v1944_v51 }
  0x66   : > { %855 = vmatprep.mubr.bf16.mxu0 %v1945_v52  ;;  %1804 = vmatprep.mubr.bf16.mxu1 %v1947_v53 }
  0x6d   : > { %856 = vmatmul.mubr.bf16.gmra.mrb[28].mxu0 %v1948_v54  ;;  %1805 = vmatmul.mubr.bf16.gmra.mrb[28].mxu1 %v1949_v55 }
  0x6e   : > { %863 = vmatprep.mubr.bf16.mxu0 %v1950_v56  ;;  %1808 = vmatprep.mubr.bf16.mxu1 %v1952_v57  ;;  %v2168_v56 = vld [vmem:[%s236_s5] ss:$0 sm:$0xff] }
  0x75   : > { %864 = vmatmul.mubr.bf16.gmra.mrb[32].mxu0 %v1953_v58  ;;  %1809 = vmatmul.mubr.bf16.gmra.mrb[32].mxu1 %v1954_v59 }
  0x76   : > { %871 = vmatprep.mubr.bf16.mxu0 %v1955_v60  ;;  %1812 = vmatprep.mubr.bf16.mxu1 %v1957_v61 }
  0x7d   : > { %872 = vmatmul.mubr.bf16.gmra.mrb[36].mxu0 %v1958_v62  ;;  %1813 = vmatmul.mubr.bf16.gmra.mrb[36].mxu1 %v1959_v63 }
  0x7e   : > { %879 = vmatprep.mubr.bf16.mxu0 %v1960_v0  ;;  %1816 = vmatprep.mubr.bf16.mxu1 %v1962_v1 }
  0x85   : > { %880 = vmatmul.mubr.bf16.gmra.mrb[40].mxu0 %v1963_v2  ;;  %1817 = vmatmul.mubr.bf16.gmra.mrb[40].mxu1 %v1964_v3 }
  0x86   : > { %887 = vmatprep.mubr.bf16.mxu0 %v1965_v4  ;;  %1820 = vmatprep.mubr.bf16.mxu1 %v1967_v5 }
  0x8d   : > { %888 = vmatmul.mubr.bf16.gmra.mrb[44].mxu0 %v1968_v6  ;;  %1821 = vmatmul.mubr.bf16.gmra.mrb[44].mxu1 %v1969_v7 }
 0x108   : > { %v1656_v8 = vpop.f32.mrb[0].mxu0  ;;  %v1728_v9 = vpop.f32.mrb[0].mxu1 }
 0x109   : > { %v1657_v10 = vpop.f32.mrb[1].mxu0  ;;  %v1729_v11 = vpop.f32.mrb[1].mxu1 }
 0x10a   : > { %v1658_v12 = vadd.f32 %v1657_v10, %v1656_v8  ;;  %v1659_v13 = vpop.f32.mrb[2].mxu0  ;;  %v2148_v14 = vadd.f32 %v1729_v11, %v1728_v9  ;;  %v1731_v15 = vpop.f32.mrb[2].mxu1 }
 0x10b   : > { %v1660_v16 = vpop.f32.mrb[3].mxu0  ;;  %v1732_v17 = vpop.f32.mrb[3].mxu1 }
 0x10c   : > { %v1661_v18 = vadd.f32 %v1660_v16, %v1659_v13  ;;  %v2150_v19 = vadd.f32 %v1732_v17, %v1731_v15  ;;  %v802_v60 = vadd.f32 %v1658_v12, %v2168_v56 }
 0x10e   : > { %v805_v5 = vadd.f32 %v1661_v18, %v2168_v56 }
 0x110   : > { %v1662_v20 = vpop.f32.mrb[4].mxu0  ;;  %v1734_v21 = vpop.f32.mrb[4].mxu1 }
 0x111   : > { %v1663_v22 = vpop.f32.mrb[5].mxu0  ;;  %v1735_v23 = vpop.f32.mrb[5].mxu1 }
 0x112   : > { %v1664_v24 = vadd.f32 %v1663_v22, %v1662_v20  ;;  %v1665_v25 = vpop.f32.mrb[6].mxu0  ;;  %v2152_v26 = vadd.f32 %v1735_v23, %v1734_v21  ;;  %v1737_v27 = vpop.f32.mrb[6].mxu1 }
 0x113   : > { %v1666_v28 = vpop.f32.mrb[7].mxu0  ;;  %v1738_v29 = vpop.f32.mrb[7].mxu1 }
 0x114   : > { %v1667_v30 = vadd.f32 %v1666_v28, %v1665_v25  ;;  %v2154_v31 = vadd.f32 %v1738_v29, %v1737_v27  ;;  %v810_v57 = vadd.f32 %v1664_v24, %v2168_v56 }
 0x116   : > { %v813_v0 = vadd.f32 %v1667_v30, %v2168_v56 }
 0x118   : > { %v1668_v32 = vpop.f32.mrb[8].mxu0  ;;  %v1740_v33 = vpop.f32.mrb[8].mxu1 }
 0x119   : > { %v1669_v34 = vpop.f32.mrb[9].mxu0  ;;  %v1741_v35 = vpop.f32.mrb[9].mxu1 }
 0x11a   : > { %v1670_v36 = vadd.f32 %v1669_v34, %v1668_v32  ;;  %v1671_v37 = vpop.f32.mrb[10].mxu0  ;;  %v2156_v38 = vadd.f32 %v1741_v35, %v1740_v33  ;;  %v1743_v39 = vpop.f32.mrb[10].mxu1 }
 0x11b   : > { %v1672_v40 = vpop.f32.mrb[11].mxu0  ;;  %v1744_v41 = vpop.f32.mrb[11].mxu1 }
 0x11c   : > { %v1673_v42 = vadd.f32 %v1672_v40, %v1671_v37  ;;  %v2158_v43 = vadd.f32 %v1744_v41, %v1743_v39  ;;  %v818_v22 = vadd.f32 %v1670_v36, %v2168_v56 }
 0x11e   : > { %v821_v33 = vadd.f32 %v1673_v42, %v2168_v56 }
 0x120   : > { %v1674_v44 = vpop.f32.mrb[12].mxu0  ;;  %v1746_v45 = vpop.f32.mrb[12].mxu1 }
 0x121   : > { %v1675_v46 = vpop.f32.mrb[13].mxu0  ;;  %v1747_v47 = vpop.f32.mrb[13].mxu1 }
 0x122   : > { %v1676_v48 = vadd.f32 %v1675_v46, %v1674_v44  ;;  %v1677_v49 = vpop.f32.mrb[14].mxu0  ;;  %v2160_v50 = vadd.f32 %v1747_v47, %v1746_v45  ;;  %v1749_v51 = vpop.f32.mrb[14].mxu1 }
 0x123   : > { %v1678_v52 = vpop.f32.mrb[15].mxu0  ;;  %v1750_v53 = vpop.f32.mrb[15].mxu1 }
 0x124   : > { %v1679_v54 = vadd.f32 %v1678_v52, %v1677_v49  ;;  %v2166_v55 = vadd.f32 %v1750_v53, %v1749_v51  ;;  %v826_v17 = vadd.f32 %v1676_v48, %v2168_v56 }
 0x126   : > { %v829_v27 = vadd.f32 %v1679_v54, %v2168_v56 }
 0x128   : > { %v1680_v58 = vpop.f32.mrb[16].mxu0  ;;  %v1794_v59 = vpop.f32.mrb[16].mxu1 }
 0x129   : > { %v971_v61 = vadd.f32 %v1794_v59, %v810_v57  ;;  %v1681_v62 = vpop.f32.mrb[17].mxu0  ;;  %v962_v63 = vpop.f32.mrb[17].mxu1 }
 0x12a   : > { %v1682_v1 = vadd.f32 %v1681_v62, %v1680_v58  ;;  %v963_v2 = vadd.f32 %v962_v63, %v802_v60  ;;  %v1683_v3 = vpop.f32.mrb[18].mxu0  ;;  %v1795_v4 = vpop.f32.mrb[18].mxu1 }
 0x12b   : > { %v974_v6 = vadd.f32 %v1795_v4, %v813_v0  ;;  %v1684_v7 = vpop.f32.mrb[19].mxu0  ;;  %v965_v8 = vpop.f32.mrb[19].mxu1  ;;  %v1091_v11 = vmax.f32 %v971_v61, 0.0 }
 0x12c   : > { %v1685_v9 = vadd.f32 %v1684_v7, %v1683_v3  ;;  %v966_v10 = vadd.f32 %v965_v8, %v805_v5  ;;  %v1089_v13 = vmax.f32 %v963_v2, 0.0  ;;  %v834_v52 = vadd.f32 %v1682_v1, %v2168_v56 }
 0x12d   : > { %v1092_v12 = vmax.f32 %v974_v6, 0.0 }
 0x12e   : > { %v1090_v15 = vmax.f32 %v966_v10, 0.0  ;;  %v837_v62 = vadd.f32 %v1685_v9, %v2168_v56 }
 0x12f   : > { %v1553_v16 = vpack.c.bf16 %v1092_v12, %v1091_v11 }
 0x130   : > { %v1548_v18 = vpack.c.bf16 %v1090_v15, %v1089_v13  ;;  %v1686_v20 = vpop.f32.mrb[20].mxu0  ;;  %v1798_v21 = vpop.f32.mrb[20].mxu1 }
 0x131   : > { %1625 = vst [vmem:[%s2179_s11 + $0x8] sm:$0xff] %v1553_v16   ;;  %v987_v23 = vadd.f32 %v1798_v21, %v826_v17  ;;  %v1687_v24 = vpop.f32.mrb[21].mxu0  ;;  %v978_v25 = vpop.f32.mrb[21].mxu1 }
 0x132   : > { %1549 = vst [vmem:[%s2179_s11] sm:$0xff] %v1548_v18   ;;  %v1688_v28 = vadd.f32 %v1687_v24, %v1686_v20  ;;  %v979_v29 = vadd.f32 %v978_v25, %v818_v22  ;;  %v1689_v30 = vpop.f32.mrb[22].mxu0  ;;  %v1799_v32 = vpop.f32.mrb[22].mxu1 }
 0x133   : > { %v990_v34 = vadd.f32 %v1799_v32, %v829_v27  ;;  %v1690_v35 = vpop.f32.mrb[23].mxu0  ;;  %v981_v37 = vpop.f32.mrb[23].mxu1  ;;  %v1095_v36 = vmax.f32 %v987_v23, 0.0 }
 0x134   : > { %v1691_v39 = vadd.f32 %v1690_v35, %v1689_v30  ;;  %v982_v40 = vadd.f32 %v981_v37, %v821_v33  ;;  %v1093_v44 = vmax.f32 %v979_v29, 0.0  ;;  %v842_v47 = vadd.f32 %v1688_v28, %v2168_v56 }
 0x135   : > { %v1096_v41 = vmax.f32 %v990_v34, 0.0 }
 0x136   : > { %v1094_v45 = vmax.f32 %v982_v40, 0.0  ;;  %v845_v57 = vadd.f32 %v1691_v39, %v2168_v56 }
 0x137   : > { %v1563_v46 = vpack.c.bf16 %v1096_v41, %v1095_v36 }
 0x138   : > { %v1558_v48 = vpack.c.bf16 %v1094_v45, %v1093_v44  ;;  %v1692_v49 = vpop.f32.mrb[24].mxu0  ;;  %v1802_v51 = vpop.f32.mrb[24].mxu1 }
 0x139   : > { %1627 = vst [vmem:[%s2179_s11 + $0x18] sm:$0xff] %v1563_v46   ;;  %v1003_v42 = vadd.f32 %v1802_v51, %v842_v47  ;;  %v1693_v53 = vpop.f32.mrb[25].mxu0  ;;  %v994_v54 = vpop.f32.mrb[25].mxu1 }
 0x13a   : > { %1626 = vst [vmem:[%s2179_s11 + $0x10] sm:$0xff] %v1558_v48   ;;  %v1694_v58 = vadd.f32 %v1693_v53, %v1692_v49  ;;  %v995_v59 = vadd.f32 %v994_v54, %v834_v52  ;;  %v1695_v60 = vpop.f32.mrb[26].mxu0  ;;  %v1803_v61 = vpop.f32.mrb[26].mxu1 }
 0x13b   : > { %v1006_v63 = vadd.f32 %v1803_v61, %v845_v57  ;;  %v1696_v0 = vpop.f32.mrb[27].mxu0  ;;  %v997_v2 = vpop.f32.mrb[27].mxu1  ;;  %v1099_v4 = vmax.f32 %v1003_v42, 0.0 }
 0x13c   : > { %v1697_v3 = vadd.f32 %v1696_v0, %v1695_v60  ;;  %v998_v1 = vadd.f32 %v997_v2, %v837_v62  ;;  %v1097_v6 = vmax.f32 %v995_v59, 0.0  ;;  %v850_v13 = vadd.f32 %v1694_v58, %v2168_v56 }
 0x13d   : > { %v1100_v5 = vmax.f32 %v1006_v63, 0.0 }
 0x13e   : > { %v1098_v7 = vmax.f32 %v998_v1, 0.0  ;;  %v853_v21 = vadd.f32 %v1697_v3, %v2168_v56 }
 0x13f   : > { %v1573_v8 = vpack.c.bf16 %v1100_v5, %v1099_v4 }
 0x140   : > { %v1568_v10 = vpack.c.bf16 %v1098_v7, %v1097_v6  ;;  %v1698_v11 = vpop.f32.mrb[28].mxu0  ;;  %v1806_v12 = vpop.f32.mrb[28].mxu1 }
 0x141   : > { %1629 = vst [vmem:[%s2179_s11 + $0x28] sm:$0xff] %v1573_v8   ;;  %v1699_v15 = vpop.f32.mrb[29].mxu0  ;;  %v1010_v16 = vpop.f32.mrb[29].mxu1 }
 0x142   : > { %1628 = vst [vmem:[%s2179_s11 + $0x20] sm:$0xff] %v1568_v10   ;;  %v1700_v9 = vadd.f32 %v1699_v15, %v1698_v11  ;;  %v1011_v17 = vadd.f32 %v1010_v16, %v850_v13  ;;  %v1701_v18 = vpop.f32.mrb[30].mxu0  ;;  %v1807_v20 = vpop.f32.mrb[30].mxu1  ;;  %v906_v10 = vadd.f32 %v2152_v26, %v2168_v56  ;;  %v898_v15 = vadd.f32 %v2148_v14, %v2168_v56 }
 0x143   : > { %v1702_v22 = vpop.f32.mrb[31].mxu0  ;;  %v1013_v23 = vpop.f32.mrb[31].mxu1 }
 0x144   : > { %v858_v24 = vadd.f32 %v1700_v9, %v2168_v56  ;;  %v1703_v25 = vadd.f32 %v1702_v22, %v1701_v18  ;;  %v1014_v27 = vadd.f32 %v1013_v23, %v853_v21  ;;  %v1101_v29 = vmax.f32 %v1011_v17, 0.0 }
 0x145   : > { %v909_v18 = vadd.f32 %v2154_v31, %v2168_v56 }
 0x146   : > { %v1019_v28 = vadd.f32 %v1806_v12, %v858_v24  ;;  %v861_v30 = vadd.f32 %v1703_v25, %v2168_v56  ;;  %v1102_v32 = vmax.f32 %v1014_v27, 0.0 }
 0x148   : > { %v1022_v33 = vadd.f32 %v1807_v20, %v861_v30  ;;  %v1578_v34 = vpack.c.bf16 %v1102_v32, %v1101_v29  ;;  %v1704_v35 = vpop.f32.mrb[32].mxu0  ;;  %v1810_v37 = vpop.f32.mrb[32].mxu1  ;;  %v1103_v36 = vmax.f32 %v1019_v28, 0.0  ;;  %v901_v28 = vadd.f32 %v2150_v19, %v2168_v56 }
 0x149   : > { %v1705_v39 = vpop.f32.mrb[33].mxu0  ;;  %v1026_v40 = vpop.f32.mrb[33].mxu1 }
 0x14a   : > { %v1104_v41 = vmax.f32 %v1022_v33, 0.0  ;;  %1630 = vst [vmem:[%s2179_s11 + $0x30] sm:$0xff] %v1578_v34   ;;  %v1706_v44 = vadd.f32 %v1705_v39, %v1704_v35  ;;  %v1707_v45 = vpop.f32.mrb[34].mxu0  ;;  %v1811_v46 = vpop.f32.mrb[34].mxu1 }
 0x14b   : > { %v1708_v47 = vpop.f32.mrb[35].mxu0  ;;  %v1029_v48 = vpop.f32.mrb[35].mxu1 }
 0x14c   : > { %v1583_v49 = vpack.c.bf16 %v1104_v41, %v1103_v36  ;;  %v866_v51 = vadd.f32 %v1706_v44, %v2168_v56  ;;  %v1709_v52 = vadd.f32 %v1708_v47, %v1707_v45  ;;  %v922_v41 = vadd.f32 %v2160_v50, %v2168_v56 }
 0x14e   : > { %1631 = vst [vmem:[%s2179_s11 + $0x38] sm:$0xff] %v1583_v49   ;;  %v1027_v42 = vadd.f32 %v1026_v40, %v866_v51  ;;  %v869_v53 = vadd.f32 %v1709_v52, %v2168_v56  ;;  %v925_v52 = vadd.f32 %v2166_v55, %v2168_v56 }
 0x150   : > { %v1030_v54 = vadd.f32 %v1029_v48, %v869_v53  ;;  %v1710_v57 = vpop.f32.mrb[36].mxu0  ;;  %v2203_v58 = vpop.f32.mrb[36].mxu1  ;;  %v1105_v61 = vmax.f32 %v1027_v42, 0.0 }
 0x151   : > { %v1711_v59 = vpop.f32.mrb[37].mxu0  ;;  %v1042_v60 = vpop.f32.mrb[37].mxu1 }
 0x152   : > { %v1106_v62 = vmax.f32 %v1030_v54, 0.0  ;;  %v1712_v63 = vadd.f32 %v1711_v59, %v1710_v57  ;;  %v1713_v0 = vpop.f32.mrb[38].mxu0  ;;  %v2205_v2 = vpop.f32.mrb[38].mxu1 }
 0x153   : > { %v1714_v3 = vpop.f32.mrb[39].mxu0  ;;  %v1045_v1 = vpop.f32.mrb[39].mxu1 }
 0x154   : > { %v1588_v4 = vpack.c.bf16 %v1106_v62, %v1105_v61  ;;  %v874_v5 = vadd.f32 %v1712_v63, %v2168_v56  ;;  %v1715_v6 = vadd.f32 %v1714_v3, %v1713_v0 }
 0x156   : > { %1632 = vst [vmem:[%s2179_s11 + $0x40] sm:$0xff] %v1588_v4   ;;  %v1035_v7 = vadd.f32 %v1810_v37, %v874_v5  ;;  %v877_v8 = vadd.f32 %v1715_v6, %v2168_v56 }
 0x158   : > { %v1038_v11 = vadd.f32 %v1811_v46, %v877_v8  ;;  %v1716_v12 = vpop.f32.mrb[40].mxu0  ;;  %v1818_v13 = vpop.f32.mrb[40].mxu1  ;;  %v1107_v20 = vmax.f32 %v1035_v7, 0.0  ;;  %v914_v46 = vadd.f32 %v2156_v38, %v2168_v56  ;;  %v917_v38 = vadd.f32 %v2158_v43, %v2168_v56 }
 0x159   : > { %v1067_v16 = vadd.f32 %v1818_v13, %v906_v10  ;;  %v1717_v9 = vpop.f32.mrb[41].mxu0  ;;  %v1058_v17 = vpop.f32.mrb[41].mxu1 }
 0x15a   : > { %v1108_v21 = vmax.f32 %v1038_v11, 0.0  ;;  %v1718_v22 = vadd.f32 %v1717_v9, %v1716_v12  ;;  %v1059_v23 = vadd.f32 %v1058_v17, %v898_v15  ;;  %v1719_v24 = vpop.f32.mrb[42].mxu0  ;;  %v1819_v25 = vpop.f32.mrb[42].mxu1 }
 0x15b   : > { %v1070_v26 = vadd.f32 %v1819_v25, %v909_v18  ;;  %v1720_v27 = vpop.f32.mrb[43].mxu0  ;;  %v1061_v29 = vpop.f32.mrb[43].mxu1  ;;  %v1115_v33 = vmax.f32 %v1067_v16, 0.0 }
 0x15c   : > { %v1593_v14 = vpack.c.bf16 %v1108_v21, %v1107_v20  ;;  %v882_v30 = vadd.f32 %v1718_v22, %v2168_v56  ;;  %v1721_v32 = vadd.f32 %v1720_v27, %v1719_v24  ;;  %v1062_v34 = vadd.f32 %v1061_v29, %v901_v28 }
 0x15d   : > { %v1116_v31 = vmax.f32 %v1070_v26, 0.0  ;;  %v1113_v39 = vmax.f32 %v1059_v23, 0.0 }
 0x15e   : > { %1633 = vst [vmem:[%s2179_s11 + $0x48] sm:$0xff] %v1593_v14   ;;  %v1043_v35 = vadd.f32 %v1042_v60, %v882_v30  ;;  %v885_v37 = vadd.f32 %v1721_v32, %v2168_v56  ;;  %v1114_v36 = vmax.f32 %v1062_v34, 0.0 }
 0x15f   : > { %v1613_v40 = vpack.c.bf16 %v1116_v31, %v1115_v33 }
 0x160   : > { %v1046_v19 = vadd.f32 %v1045_v1, %v885_v37  ;;  %v1722_v44 = vpop.f32.mrb[44].mxu0  ;;  %v1822_v45 = vpop.f32.mrb[44].mxu1  ;;  %v1608_v47 = vpack.c.bf16 %v1114_v36, %v1113_v39  ;;  %v1109_v42 = vmax.f32 %v1043_v35, 0.0 }
 0x161   : > { %1637 = vst [vmem:[%s2179_s11 + $0x68] sm:$0xff] %v1613_v40   ;;  %v1083_v48 = vadd.f32 %v1822_v45, %v922_v41  ;;  %v1723_v49 = vpop.f32.mrb[45].mxu0  ;;  %v1074_v51 = vpop.f32.mrb[45].mxu1 }
 0x162   : > { %v1110_v53 = vmax.f32 %v1046_v19, 0.0  ;;  %v1724_v54 = vadd.f32 %v1723_v49, %v1722_v44  ;;  %v1075_v50 = vadd.f32 %v1074_v51, %v914_v46  ;;  %v1725_v57 = vpop.f32.mrb[46].mxu0  ;;  %v1823_v59 = vpop.f32.mrb[46].mxu1  ;;  %1636 = vst [vmem:[%s2179_s11 + $0x60] sm:$0xff] %v1608_v47  }
 0x163   : > { %v1086_v60 = vadd.f32 %v1823_v59, %v925_v52  ;;  %v1726_v61 = vpop.f32.mrb[47].mxu0  ;;  %v1077_v62 = vpop.f32.mrb[47].mxu1  ;;  %v1119_v3 = vmax.f32 %v1083_v48, 0.0 }
 0x164   : > { %v1598_v63 = vpack.c.bf16 %v1110_v53, %v1109_v42  ;;  %v890_v0 = vadd.f32 %v1724_v54, %v2168_v56  ;;  %v1727_v55 = vadd.f32 %v1726_v61, %v1725_v57  ;;  %v1078_v4 = vadd.f32 %v1077_v62, %v917_v38 }
 0x165   : > { %v1120_v1 = vmax.f32 %v1086_v60, 0.0  ;;  %v1117_v7 = vmax.f32 %v1075_v50, 0.0 }
 0x166   : > { %1634 = vst [vmem:[%s2179_s11 + $0x50] sm:$0xff] %v1598_v63   ;;  %v1051_v5 = vadd.f32 %v2203_v58, %v890_v0  ;;  %v893_v6 = vadd.f32 %v1727_v55, %v2168_v56  ;;  %v1118_v10 = vmax.f32 %v1078_v4, 0.0 }
 0x167   : > { %v1623_v8 = vpack.c.bf16 %v1120_v1, %v1119_v3 }
 0x168   : > { %v1054_v43 = vadd.f32 %v2205_v2, %v893_v6  ;;  %v1618_v11 = vpack.c.bf16 %v1118_v10, %v1117_v7  ;;  %v1111_v12 = vmax.f32 %v1051_v5, 0.0 }
 0x169   : > { %1639 = vst [vmem:[%s2179_s11 + $0x78] sm:$0xff] %v1623_v8  }
 0x16a   : > { %v1112_v13 = vmax.f32 %v1054_v43, 0.0  ;;  %1638 = vst [vmem:[%s2179_s11 + $0x70] sm:$0xff] %v1618_v11  }
 0x16c   : > { %v1603_v15 = vpack.c.bf16 %v1112_v13, %v1111_v12 }
 0x16e   : > { %1635 = vst [vmem:[%s2179_s11 + $0x58] sm:$0xff] %v1603_v15  }
 0x16f PF: > { %s13_s16 = sadd.s32 1, %s2008_s16   ;;  %s2258_s12 = smov %s2000_s14 }
 0x170   : > { %p10_p7 = scmp.ge.s32.totalorder %s13_s16, 6   ;;  %s2259_s13 = smov %s2004_s15 }
 0x171   : > { %s2260_s14 = smov %s2263_s17  ;;  %s2261_s15 = smov %s2267_s18 }
 0x172   :  { %12 = sbr.rel (!%p10_p7) target bundleno = 3 (0x3), region = 68 }

// kernel: cfm_forward.3
= control target key start
LH: loop header
LB: loop body
LE: loop exit
PB: predicated region body
PF: predicated region fallthrough
CT: control target
= control target key end

     0   :  { %s1809_s12 = smov 0   ;;  %s1811_s13 = smov 0   ;;  %s2114_s0 = inlined_call_operand.vmem [shape: bf16[2,512,128], index: 0, kind: input, shape index: {}]   ;;  %s2115_s1 = inlined_call_operand.vmem [shape: bf16[2,128,128], index: 1, kind: input, shape index: {}]   ;;  %s2116_s2 = inlined_call_operand.vmem [shape: bf16[2,512,128], index: 2, kind: input, shape index: {}]   ;;  %s2117_s3 = inlined_call_operand.vmem [shape: bf16[2,512,128], index: 3, kind: output, shape index: {}]  }
   0x1   :  { %s1813_s14 = smov 0   ;;  %s1815_s15 = smov 0  }
   0x2   :  { %s1817_s16 = smov 0  }
   0x3 LB: > { %s22_s17 = sadd.s32 1, %s1779_s14  ;;  %s25_s18 = sadd.s32 1, %s1783_s15  ;;  %s1787_s16 = sphi %s1817_s16, %s13_s16   ;;  %s1783_s15 = sphi %s1815_s15, %s2121_s15   ;;  %s1779_s14 = sphi %s1813_s14, %s2120_s14   ;;  %s1775_s13 = sphi %s1811_s13, %s2119_s13   ;;  %s1771_s12 = sphi %s1809_s12, %s2118_s12  }
   0x4   : > { %p23_p0 = scmp.ge.s32.totalorder %s22_s17, 2  ;;  %p1192_p1 = scmp.ge.s32.totalorder %s1787_s16, 1 }
   0x5   : > { %p185_p2 = scmp.lt.s32.totalorder %s1787_s16, 5 }
   0x6   : > { %s2123_s17 = smov (%p23_p0, %s22_s17), 0  ;;  %s2125_s18 = smov (!%p23_p0, %s25_s18), %s1783_s15 }
   0x7   : > { %p186_p3 = pnand %p1192_p1, %p185_p2  ;;  %p27_p4 = scmp.ge.s32.totalorder %s2125_s18, 2 }
   0x8   : > { %s1193_s19 = sshll.u32 (!%p186_p3), %s1771_s12, 5  ;;  %p232_p5 = scmp.lt.s32.totalorder (!%p186_p3), %s1775_s13, 1 }
   0x9   : > { %s2127_s18 = smov (%p27_p4, %s2125_s18), 0  ;;  %189 = sbr.rel (%p186_p3) target bundleno = 358 (0x166), region = 32 }
   0xa   : > { %p234_p6 = scmp.lt.s32.totalorder (!%p186_p3), %s1193_s19, 63 }
  0x10   : > { %s2129_s13 = smov (!%p232_p5, %s1775_s13), 1  ;;  %s2131_s19 = smov (!%p234_p6, %s1193_s19), 63 }
  0x11   : > { %s1194_s20 = sshll.u32 %s2129_s13, 6 }
  0x12   : > { %s237_s21 = sadd.s32 %s1194_s20, %s2131_s19  ;;  %s1842_s24 = scalar_lea.vmem %s2115_s1, %s1194_s20 }
  0x13   : > { %v1597_v0 = vld [vmem:[%s1842_s24] sm:$0xff]   ;;  %v1598_v1 = vld [vmem:[%s1842_s24 + $0x8] sm:$0xff]   ;;  %s1846_s25 = sshll.u32 %s237_s21, 2  ;;  %v1599_v2 = vld [vmem:[%s1842_s24 + $0x10] sm:$0xff]  }
  0x14   : > { %1493 = vmatprep.subr.bf16.mxu0 %v1597_v0  ;;  %1541 = vmatprep.subr.bf16.mxu1 %v1597_v0  ;;  %s1853_s28 = scalar_lea.vmem %s2114_s0, %s1846_s25  ;;  %v1600_v3 = vld [vmem:[%s1842_s24 + $0x18] sm:$0xff]   ;;  %v1601_v6 = vld [vmem:[%s1842_s24 + $0x20] sm:$0xff]   ;;  %v1602_v7 = vld [vmem:[%s1842_s24 + $0x28] sm:$0xff]   ;;  %s1880_s4 = scalar_lea.vmem %s2116_s2, %s1846_s25 }
  0x15   : > { %1494 = vmatpush3.bf16.msra.mxu0 %v1597_v0  ;;  %1549 = vmatpush3.bf16.msra.mxu1 %v1597_v0  ;;  %v1605_v4 = vld [vmem:[%s1853_s28] sm:$0xff]   ;;  %v1603_v8 = vld [vmem:[%s1842_s24 + $0x30] sm:$0xff]   ;;  %v1604_v9 = vld [vmem:[%s1842_s24 + $0x38] sm:$0xff]   ;;  %s1983_s7 = scalar_lea.vmem %s2117_s3, %s1846_s25 }
  0x16   : > { %1495 = vmatprep.subr.bf16.mxu0 %v1598_v1  ;;  %1542 = vmatprep.subr.bf16.mxu1 %v1598_v1  ;;  %v1606_v5 = vld [vmem:[%s1853_s28 + $0x40] sm:$0xff]   ;;  %v1607_v10 = vld [vmem:[%s1853_s28 + $0x8] sm:$0xff]   ;;  %v1609_v12 = vld [vmem:[%s1853_s28 + $0x10] sm:$0xff]  }
  0x17   : > { %1509 = vmatprep.mubr.bf16.mxu0 %v1605_v4  ;;  %1525 = vmatprep.mubr.bf16.mxu1 %v1606_v5  ;;  %v1608_v11 = vld [vmem:[%s1853_s28 + $0x48] sm:$0xff]   ;;  %v1610_v13 = vld [vmem:[%s1853_s28 + $0x50] sm:$0xff]   ;;  %v1611_v14 = vld [vmem:[%s1853_s28 + $0x18] sm:$0xff]  }
  0x18   : > { %v1612_v15 = vld [vmem:[%s1853_s28 + $0x58] sm:$0xff]   ;;  %v1613_v16 = vld [vmem:[%s1853_s28 + $0x20] sm:$0xff]   ;;  %v1615_v18 = vld [vmem:[%s1853_s28 + $0x28] sm:$0xff]  }
  0x19   : > { %1496 = vmatpush3.bf16.msra.mxu0 %v1598_v1  ;;  %1550 = vmatpush3.bf16.msra.mxu1 %v1598_v1  ;;  %v1614_v17 = vld [vmem:[%s1853_s28 + $0x60] sm:$0xff]   ;;  %v1616_v19 = vld [vmem:[%s1853_s28 + $0x68] sm:$0xff]   ;;  %v1617_v20 = vld [vmem:[%s1853_s28 + $0x30] sm:$0xff]  }
  0x1a   : > { %1497 = vmatprep.subr.bf16.mxu0 %v1599_v2  ;;  %1543 = vmatprep.subr.bf16.mxu1 %v1599_v2  ;;  %v1618_v21 = vld [vmem:[%s1853_s28 + $0x70] sm:$0xff]   ;;  %v1619_v22 = vld [vmem:[%s1853_s28 + $0x38] sm:$0xff]   ;;  %v1883_v54 = vld [vmem:[%s1880_s4 + $0x8] sm:$0xff]  }
  0x1b   : > { %v1620_v23 = vld [vmem:[%s1853_s28 + $0x78] sm:$0xff]   ;;  %v1886_v55 = vld [vmem:[%s1880_s4 + $0x48] sm:$0xff]   ;;  %v1891_v0 = vld [vmem:[%s1880_s4] sm:$0xff]  }
  0x1c   : > { %v1894_v4 = vld [vmem:[%s1880_s4 + $0x40] sm:$0xff]  }
  0x1d   : > { %1498 = vmatpush3.bf16.msra.mxu0 %v1599_v2  ;;  %1551 = vmatpush3.bf16.msra.mxu1 %v1599_v2 }
  0x1e   : > { %1499 = vmatprep.subr.bf16.mxu0 %v1600_v3  ;;  %1544 = vmatprep.subr.bf16.mxu1 %v1600_v3 }
  0x21   : > { %1500 = vmatpush3.bf16.msra.mxu0 %v1600_v3  ;;  %1552 = vmatpush3.bf16.msra.mxu1 %v1600_v3 }
  0x22   : > { %1501 = vmatprep.subr.bf16.mxu0 %v1601_v6  ;;  %1545 = vmatprep.subr.bf16.mxu1 %v1601_v6 }
  0x25   : > { %1502 = vmatpush3.bf16.msra.mxu0 %v1601_v6  ;;  %1553 = vmatpush3.bf16.msra.mxu1 %v1601_v6 }
  0x26   : > { %1503 = vmatprep.subr.bf16.mxu0 %v1602_v7  ;;  %1546 = vmatprep.subr.bf16.mxu1 %v1602_v7 }
  0x29   : > { %1504 = vmatpush3.bf16.msra.mxu0 %v1602_v7  ;;  %1554 = vmatpush3.bf16.msra.mxu1 %v1602_v7  ;;  %v1301_v7 = vunpack.c.l.bf16 %v1883_v54 }
  0x2a   : > { %1505 = vmatprep.subr.bf16.mxu0 %v1603_v8  ;;  %1547 = vmatprep.subr.bf16.mxu1 %v1603_v8 }
  0x2d   : > { %1506 = vmatpush3.bf16.msra.mxu0 %v1603_v8  ;;  %1555 = vmatpush3.bf16.msra.mxu1 %v1603_v8  ;;  %v1333_v8 = vunpack.c.l.bf16 %v1886_v55 }
  0x2e   : > { %1507 = vmatprep.subr.bf16.mxu0 %v1604_v9  ;;  %1548 = vmatprep.subr.bf16.mxu1 %v1604_v9 }
  0x31   : > { %1508 = vmatpush3.bf16.msra.mxu0 %v1604_v9  ;;  %1556 = vmatpush3.bf16.msra.mxu1 %v1604_v9  ;;  %v1297_v9 = vunpack.c.l.bf16 %v1891_v0 }
  0x34   : > { %1510 = vmatmul.mubr.bf16.vlgmr.msra.gmra.mrb[0].mxu0 %v1607_v10  ;;  %1526 = vmatmul.mubr.bf16.vlgmr.msra.gmra.mrb[0].mxu1 %v1608_v11 }
  0x35   : > { %1513 = vmatprep.mubr.bf16.mxu0 %v1609_v12  ;;  %1529 = vmatprep.mubr.bf16.mxu1 %v1610_v13  ;;  %v1329_v12 = vunpack.c.l.bf16 %v1894_v4  ;;  %v1302_v13 = vunpack.c.h.bf16 %v1883_v54 }
  0x3c   : > { %1514 = vmatmul.mubr.bf16.gmra.mrb[4].mxu0 %v1611_v14  ;;  %1530 = vmatmul.mubr.bf16.gmra.mrb[4].mxu1 %v1612_v15 }
  0x3d   : > { %1517 = vmatprep.mubr.bf16.mxu0 %v1613_v16  ;;  %1533 = vmatprep.mubr.bf16.mxu1 %v1614_v17 }
  0x44   : > { %1518 = vmatmul.mubr.bf16.gmra.mrb[8].mxu0 %v1615_v18  ;;  %1534 = vmatmul.mubr.bf16.gmra.mrb[8].mxu1 %v1616_v19  ;;  %v1334_v18 = vunpack.c.h.bf16 %v1886_v55  ;;  %v1298_v19 = vunpack.c.h.bf16 %v1891_v0 }
  0x45   : > { %1521 = vmatprep.mubr.bf16.mxu0 %v1617_v20  ;;  %1537 = vmatprep.mubr.bf16.mxu1 %v1618_v21  ;;  %v1906_v20 = vld [vmem:[%s1880_s4 + $0x18] sm:$0xff]  }
  0x46   : > { %v1909_v21 = vld [vmem:[%s1880_s4 + $0x58] sm:$0xff]  }
  0x4c   : > { %1522 = vmatmul.mubr.bf16.gmra.mrb[12].mxu0 %v1619_v22  ;;  %1538 = vmatmul.mubr.bf16.gmra.mrb[12].mxu1 %v1620_v23 }
 0x107   : > { %v1511_v24 = vpop.f32.mrb[0].mxu0  ;;  %v1527_v25 = vpop.f32.mrb[0].mxu1 }
 0x108   : > { %v622_v26 = vsub.f32 0.0, %v1511_v24  ;;  %v638_v27 = vsub.f32 0.0, %v1527_v25  ;;  %v493_v28 = vpop.f32.mrb[1].mxu0  ;;  %v557_v29 = vpop.f32.mrb[1].mxu1 }
 0x109   : > { %v620_v30 = vsub.f32 0.0, %v493_v28  ;;  %v636_v31 = vsub.f32 0.0, %v557_v29  ;;  %v1512_v32 = vpop.f32.mrb[2].mxu0  ;;  %v1528_v33 = vpop.f32.mrb[2].mxu1 }
 0x10a   : > { %v656_v34 = vmul.f32 1.442695, %v622_v26  ;;  %v688_v35 = vmul.f32 1.442695, %v638_v27  ;;  %v623_v36 = vsub.f32 0.0, %v1512_v32  ;;  %v639_v37 = vsub.f32 0.0, %v1528_v33 }
 0x10b   : > { %v652_v38 = vmul.f32 1.442695, %v620_v30  ;;  %v684_v39 = vmul.f32 1.442695, %v636_v31  ;;  %v496_v40 = vpop.f32.mrb[3].mxu0  ;;  %v560_v41 = vpop.f32.mrb[3].mxu1  ;;  %v1330_v33 = vunpack.c.h.bf16 %v1894_v4 }
 0x10c   : > { %1621 = vpow2.f32 %v656_v34  ;;  %v658_v42 = vmul.f32 1.442695, %v623_v36  ;;  %v621_v43 = vsub.f32 0.0, %v496_v40  ;;  %v690_v44 = vmul.f32 1.442695, %v639_v37  ;;  %v1916_v26 = vld [vmem:[%s1880_s4 + $0x10] sm:$0xff]  }
 0x10d   : > { %1623 = vpow2.f32 %v688_v35  ;;  %v637_v45 = vsub.f32 0.0, %v560_v41 }
 0x10e   : > { %1625 = vpow2.f32 %v652_v38  ;;  %v654_v46 = vmul.f32 1.442695, %v621_v43  ;;  %v1309_v38 = vunpack.c.l.bf16 %v1906_v20  ;;  %v1305_v43 = vunpack.c.l.bf16 %v1916_v26 }
 0x10f   : > { %1627 = vpow2.f32 %v684_v39  ;;  %v686_v47 = vmul.f32 1.442695, %v637_v45  ;;  %v1515_v48 = vpop.f32.mrb[4].mxu0  ;;  %v1531_v49 = vpop.f32.mrb[4].mxu1  ;;  %v1341_v39 = vunpack.c.l.bf16 %v1909_v21 }
 0x110   : > { %1629 = vpow2.f32 %v658_v42  ;;  %v626_v50 = vsub.f32 0.0, %v1515_v48  ;;  %v642_v51 = vsub.f32 0.0, %v1531_v49  ;;  %v509_v52 = vpop.f32.mrb[5].mxu0  ;;  %v573_v53 = vpop.f32.mrb[5].mxu1 }
 0x111   : > { %1631 = vpow2.f32 %v690_v44  ;;  %v624_v56 = vsub.f32 0.0, %v509_v52  ;;  %v640_v57 = vsub.f32 0.0, %v573_v53  ;;  %v1516_v58 = vpop.f32.mrb[6].mxu0  ;;  %v1888_v59 = vpop.f32.mrb[6].mxu1 }
 0x112   : > { %1633 = vpow2.f32 %v654_v46  ;;  %v664_v60 = vmul.f32 1.442695, %v626_v50  ;;  %v696_v61 = vmul.f32 1.442695, %v642_v51  ;;  %v627_v62 = vsub.f32 0.0, %v1516_v58  ;;  %v512_v63 = vpop.f32.mrb[7].mxu0 }
 0x113   : > { %1635 = vpow2.f32 %v686_v47  ;;  %v660_v1 = vmul.f32 1.442695, %v624_v56  ;;  %v692_v2 = vmul.f32 1.442695, %v640_v57  ;;  %v576_v3 = vpop.f32.mrb[7].mxu1  ;;  %v643_v27 = vsub.f32 0.0, %v1888_v59 }
 0x114   : > { %1637 = vpow2.f32 %v664_v60  ;;  %v666_v5 = vmul.f32 1.442695, %v627_v62  ;;  %v625_v28 = vsub.f32 0.0, %v512_v63  ;;  %v641_v34 = vsub.f32 0.0, %v576_v3  ;;  %v1932_v47 = vld [vmem:[%s1880_s4 + $0x50] sm:$0xff]  }
 0x115   : > { %1639 = vpow2.f32 %v696_v61  ;;  %v698_v48 = vmul.f32 1.442695, %v643_v27  ;;  %v1337_v63 = vunpack.c.l.bf16 %v1932_v47 }
 0x116   : > { %v1622_v6 = vpop.eup %1621  ;;  %1641 = vpow2.f32 %v660_v1  ;;  %v662_v49 = vmul.f32 1.442695, %v625_v28  ;;  %v694_v52 = vmul.f32 1.442695, %v641_v34 }
 0x117   : > { %v1624_v10 = vpop.eup %1623  ;;  %v718_v11 = vadd.f32 1.0, %v1622_v6  ;;  %1643 = vpow2.f32 %v692_v2  ;;  %v1519_v14 = vpop.f32.mrb[8].mxu0 }
 0x118   : > { %v1901_v15 = vpop.f32.mrb[8].mxu1  ;;  %v1626_v16 = vpop.eup %1625  ;;  %v734_v17 = vadd.f32 1.0, %v1624_v10  ;;  %1645 = vpow2.f32 %v666_v5  ;;  %v630_v44 = vsub.f32 0.0, %v1519_v14 }
 0x119   : > { %v1911_v22 = vpop.f32.mrb[9].mxu0  ;;  %v1913_v23 = vpop.f32.mrb[9].mxu1  ;;  %1647 = vrcp.f32 %v718_v11  ;;  %v716_v25 = vadd.f32 1.0, %v1626_v16  ;;  %v646_v53 = vsub.f32 0.0, %v1901_v15 }
 0x11a   : > { %v1628_v24 = vpop.eup %1627  ;;  %v1919_v29 = vpop.f32.mrb[10].mxu0  ;;  %1649 = vrcp.f32 %v734_v17  ;;  %v628_v58 = vsub.f32 0.0, %v1911_v22  ;;  %v644_v59 = vsub.f32 0.0, %v1913_v23  ;;  %v672_v1 = vmul.f32 1.442695, %v630_v44 }
 0x11b   : > { %v1921_v30 = vpop.f32.mrb[10].mxu1  ;;  %v1630_v31 = vpop.eup %1629  ;;  %v732_v32 = vadd.f32 1.0, %v1628_v24  ;;  %1651 = vrcp.f32 %v716_v25  ;;  %v631_v10 = vsub.f32 0.0, %v1919_v29  ;;  %v1310_v22 = vunpack.c.h.bf16 %v1906_v20 }
 0x11c   : > { %v1924_v35 = vpop.f32.mrb[11].mxu0  ;;  %v1632_v36 = vpop.eup %1631  ;;  %v719_v37 = vadd.f32 1.0, %v1630_v31  ;;  %v647_v11 = vsub.f32 0.0, %v1921_v30  ;;  %v704_v23 = vmul.f32 1.442695, %v646_v53  ;;  %v1342_v20 = vunpack.c.h.bf16 %v1909_v21 }
 0x11d   : > { %v1928_v40 = vpop.f32.mrb[11].mxu1  ;;  %v1634_v41 = vpop.eup %1633  ;;  %1653 = vrcp.f32 %v732_v32  ;;  %v735_v42 = vadd.f32 1.0, %v1632_v36  ;;  %v668_v29 = vmul.f32 1.442695, %v628_v58  ;;  %v700_v31 = vmul.f32 1.442695, %v644_v59 }
 0x11e   : > { %v1636_v45 = vpop.eup %1635  ;;  %1655 = vrcp.f32 %v719_v37  ;;  %v717_v46 = vadd.f32 1.0, %v1634_v41  ;;  %v629_v36 = vsub.f32 0.0, %v1924_v35  ;;  %v645_v37 = vsub.f32 0.0, %v1928_v40 }
 0x11f   : > { %v1638_v50 = vpop.eup %1637  ;;  %1657 = vrcp.f32 %v735_v42  ;;  %v733_v51 = vadd.f32 1.0, %v1636_v45  ;;  %v1523_v60 = vpop.f32.mrb[12].mxu0  ;;  %v674_v44 = vmul.f32 1.442695, %v631_v10  ;;  %v706_v45 = vmul.f32 1.442695, %v647_v11 }
 0x120   : > { %v1640_v56 = vpop.eup %1639  ;;  %1659 = vrcp.f32 %v717_v46  ;;  %v722_v57 = vadd.f32 1.0, %v1638_v50  ;;  %v1539_v2 = vpop.f32.mrb[12].mxu1  ;;  %v634_v53 = vsub.f32 0.0, %v1523_v60 }
 0x121   : > { %v1642_v61 = vpop.eup %1641  ;;  %1661 = vrcp.f32 %v733_v51  ;;  %v738_v62 = vadd.f32 1.0, %v1640_v56  ;;  %v1938_v3 = vpop.f32.mrb[13].mxu0 }
 0x122   : > { %v1644_v5 = vpop.eup %1643  ;;  %1663 = vrcp.f32 %v722_v57  ;;  %v720_v6 = vadd.f32 1.0, %v1642_v61  ;;  %v1942_v14 = vpop.f32.mrb[13].mxu1  ;;  %v650_v57 = vsub.f32 0.0, %v1539_v2 }
 0x123   : > { %v1944_v15 = vpop.f32.mrb[14].mxu0  ;;  %v1646_v16 = vpop.eup %1645  ;;  %1665 = vrcp.f32 %v738_v62  ;;  %v736_v17 = vadd.f32 1.0, %v1644_v5  ;;  %v680_v5 = vmul.f32 1.442695, %v634_v53 }
 0x124   : > { %v1947_v24 = vpop.f32.mrb[14].mxu1  ;;  %v1949_v25 = vpop.f32.mrb[15].mxu0  ;;  %1667 = vrcp.f32 %v720_v6  ;;  %v723_v28 = vadd.f32 1.0, %v1646_v16  ;;  %v712_v54 = vmul.f32 1.442695, %v650_v57  ;;  %v1338_v57 = vunpack.c.h.bf16 %v1932_v47 }
 0x125   : > { %v1648_v27 = vpop.eup %1647  ;;  %v1951_v30 = vpop.f32.mrb[15].mxu1  ;;  %1669 = vrcp.f32 %v736_v17 }
 0x126   : > { %v1650_v32 = vpop.eup %1649  ;;  %v846_v34 = vmul.f32 %v1648_v27, %v1301_v7  ;;  %1671 = vrcp.f32 %v723_v28 }
 0x127   : > { %v1652_v41 = vpop.eup %1651  ;;  %v862_v42 = vmul.f32 %v1650_v32, %v1333_v8  ;;  %1673 = vpow2.f32 %v698_v48  ;;  %v670_v48 = vmul.f32 1.442695, %v629_v36 }
 0x128   : > { %v1654_v46 = vpop.eup %1653  ;;  %v878_v50 = vadd.f32 %v1301_v7, %v846_v34  ;;  %v844_v51 = vmul.f32 %v1652_v41, %v1297_v9  ;;  %1675 = vpow2.f32 %v662_v49  ;;  %v702_v49 = vmul.f32 1.442695, %v645_v37 }
 0x129   : > { %v1656_v56 = vpop.eup %1655  ;;  %v894_v35 = vadd.f32 %v1333_v8, %v862_v42  ;;  %v860_v40 = vmul.f32 %v1654_v46, %v1329_v12  ;;  %1677 = vpow2.f32 %v694_v52 }
 0x12a   : > { %v1658_v58 = vpop.eup %1657  ;;  %v876_v59 = vadd.f32 %v1297_v9, %v844_v51  ;;  %v847_v7 = vmul.f32 %v1656_v56, %v1302_v13  ;;  %1679 = vpow2.f32 %v672_v1  ;;  %v2027_v51 = vld [vmem:[%s1880_s4 + $0x68] sm:$0xff]   ;;  %v2031_v56 = vld [vmem:[%s1880_s4 + $0x20] sm:$0xff]  }
 0x12b   : > { %v1660_v60 = vpop.eup %1659  ;;  %v892_v61 = vadd.f32 %v1329_v12, %v860_v40  ;;  %v863_v8 = vmul.f32 %v1658_v58, %v1334_v18  ;;  %1681 = vpow2.f32 %v704_v23  ;;  %v1306_v40 = vunpack.c.h.bf16 %v1916_v26 }
 0x12c   : > { %v1662_v62 = vpop.eup %1661  ;;  %v879_v2 = vadd.f32 %v1302_v13, %v847_v7  ;;  %v845_v9 = vmul.f32 %v1660_v60, %v1298_v19  ;;  %1683 = vpow2.f32 %v668_v29  ;;  %v1349_v21 = vunpack.c.l.bf16 %v2027_v51 }
 0x12d   : > { %v1664_v52 = vpop.eup %1663  ;;  %v895_v12 = vadd.f32 %v1334_v18, %v863_v8  ;;  %v861_v1 = vmul.f32 %v1662_v62, %v1330_v33  ;;  %1685 = vpow2.f32 %v700_v31  ;;  %v1313_v8 = vunpack.c.l.bf16 %v2031_v56 }
 0x12e   : > { %v1666_v13 = vpop.eup %1665  ;;  %v1367_v6 = vpack.c.bf16 %v879_v2, %v878_v50  ;;  %v877_v10 = vadd.f32 %v1298_v19, %v845_v9  ;;  %v850_v11 = vmul.f32 %v1664_v52, %v1309_v38  ;;  %1687 = vpow2.f32 %v674_v44 }
 0x12f   : > { %v1668_v16 = vpop.eup %1667  ;;  %v1407_v17 = vpack.c.bf16 %v895_v12, %v894_v35  ;;  %v893_v55 = vadd.f32 %v1330_v33, %v861_v1  ;;  %v866_v18 = vmul.f32 %v1666_v13, %v1341_v39  ;;  %1689 = vpow2.f32 %v706_v45 }
 0x130   : > { %v1670_v23 = vpop.eup %1669  ;;  %1454 = vst [vmem:[%s1983_s7 + $0x8] sm:$0xff] %v1367_v6   ;;  %v1362_v27 = vpack.c.bf16 %v877_v10, %v876_v59  ;;  %v882_v0 = vadd.f32 %v1309_v38, %v850_v11  ;;  %v848_v19 = vmul.f32 %v1668_v16, %v1305_v43  ;;  %1691 = vpow2.f32 %v670_v48  ;;  %v2037_v59 = vld [vmem:[%s1880_s4 + $0x60] sm:$0xff]  }
 0x131   : > { %v1672_v28 = vpop.eup %1671  ;;  %1462 = vst [vmem:[%s1983_s7 + $0x48] sm:$0xff] %v1407_v17   ;;  %v1402_v4 = vpack.c.bf16 %v893_v55, %v892_v61  ;;  %v2005_v33 = vadd.f32 %v1341_v39, %v866_v18  ;;  %v864_v29 = vmul.f32 %v1670_v23, %v1337_v63  ;;  %1693 = vpow2.f32 %v702_v49 }
 0x132   : > { %v1674_v31 = vpop.eup %1673  ;;  %1363 = vst [vmem:[%s1983_s7] sm:$0xff] %v1362_v27   ;;  %v2012_v38 = vadd.f32 %v1305_v43, %v848_v19  ;;  %v851_v32 = vmul.f32 %v1672_v28, %v1310_v22  ;;  %1695 = vpow2.f32 %v680_v5  ;;  %v632_v26 = vsub.f32 0.0, %v1938_v3 }
 0x133   : > { %v1676_v34 = vpop.eup %1675  ;;  %1461 = vst [vmem:[%s1983_s7 + $0x40] sm:$0xff] %v1402_v4   ;;  %v2019_v39 = vadd.f32 %v1337_v63, %v864_v29  ;;  %v739_v36 = vadd.f32 1.0, %v1674_v31  ;;  %1697 = vpow2.f32 %v712_v54  ;;  %v2024_v63 = vld [vmem:[%s1880_s4 + $0x28] sm:$0xff]   ;;  %v1345_v47 = vunpack.c.l.bf16 %v2037_v59 }
 0x134   : > { %v1678_v37 = vpop.eup %1677  ;;  %v883_v41 = vadd.f32 %v1310_v22, %v851_v32  ;;  %v721_v43 = vadd.f32 1.0, %v1676_v34  ;;  %v1317_v48 = vunpack.c.l.bf16 %v2024_v63  ;;  %v648_v9 = vsub.f32 0.0, %v1942_v14 }
 0x135   : > { %v1680_v42 = vpop.eup %1679  ;;  %1699 = vrcp.f32 %v739_v36  ;;  %v737_v44 = vadd.f32 1.0, %v1678_v37  ;;  %v1318_v52 = vunpack.c.h.bf16 %v2024_v63  ;;  %v635_v1 = vsub.f32 0.0, %v1944_v15 }
 0x136   : > { %v1682_v45 = vpop.eup %1681  ;;  %v1377_v46 = vpack.c.bf16 %v883_v41, %v882_v0  ;;  %1701 = vrcp.f32 %v721_v43  ;;  %v726_v50 = vadd.f32 1.0, %v1680_v42  ;;  %v1350_v13 = vunpack.c.h.bf16 %v2027_v51 }
 0x137   : > { %v1684_v53 = vpop.eup %1683  ;;  %1703 = vrcp.f32 %v737_v44  ;;  %v742_v22 = vadd.f32 1.0, %v1682_v45  ;;  %v651_v3 = vsub.f32 0.0, %v1947_v24  ;;  %v676_v16 = vmul.f32 1.442695, %v632_v26 }
 0x138   : > { %v1686_v35 = vpop.eup %1685  ;;  %1456 = vst [vmem:[%s1983_s7 + $0x18] sm:$0xff] %v1377_v46   ;;  %1705 = vrcp.f32 %v726_v50  ;;  %v724_v58 = vadd.f32 1.0, %v1684_v53  ;;  %v633_v14 = vsub.f32 0.0, %v1949_v25  ;;  %v708_v18 = vmul.f32 1.442695, %v648_v9  ;;  %v2057_v46 = vld [vmem:[%s1880_s4 + $0x38] sm:$0xff]  }
 0x139   : > { %v1688_v7 = vpop.eup %1687  ;;  %1707 = vrcp.f32 %v742_v22  ;;  %v740_v60 = vadd.f32 1.0, %v1686_v35  ;;  %v649_v23 = vsub.f32 0.0, %v1951_v30  ;;  %v1314_v0 = vunpack.c.h.bf16 %v2031_v56  ;;  %v2063_v35 = vld [vmem:[%s1880_s4 + $0x78] sm:$0xff]  }
 0x13a   : > { %v1690_v61 = vpop.eup %1689  ;;  %1709 = vrcp.f32 %v724_v58  ;;  %v727_v49 = vadd.f32 1.0, %v1688_v7  ;;  %v682_v19 = vmul.f32 1.442695, %v635_v1  ;;  %v1346_v4 = vunpack.c.h.bf16 %v2037_v59 }
 0x13b   : > { %v1692_v62 = vpop.eup %1691  ;;  %1711 = vrcp.f32 %v740_v60  ;;  %v743_v2 = vadd.f32 1.0, %v1690_v61  ;;  %v714_v29 = vmul.f32 1.442695, %v651_v3  ;;  %v678_v34 = vmul.f32 1.442695, %v633_v14 }
 0x13c   : > { %v1694_v5 = vpop.eup %1693  ;;  %1713 = vrcp.f32 %v727_v49  ;;  %v725_v12 = vadd.f32 1.0, %v1692_v62  ;;  %v710_v41 = vmul.f32 1.442695, %v649_v23  ;;  %v1325_v60 = vunpack.c.l.bf16 %v2057_v46 }
 0x13d   : > { %v1696_v54 = vpop.eup %1695  ;;  %1715 = vrcp.f32 %v743_v2  ;;  %v741_v6 = vadd.f32 1.0, %v1694_v5  ;;  %v1357_v49 = vunpack.c.l.bf16 %v2063_v35 }
 0x13e   : > { %v1698_v10 = vpop.eup %1697  ;;  %1717 = vrcp.f32 %v725_v12  ;;  %v730_v11 = vadd.f32 1.0, %v1696_v54 }
 0x13f   : > { %v1700_v17 = vpop.eup %1699  ;;  %1719 = vrcp.f32 %v741_v6  ;;  %v746_v55 = vadd.f32 1.0, %v1698_v10 }
 0x140   : > { %v1702_v15 = vpop.eup %1701  ;;  %v867_v27 = vmul.f32 %v1700_v17, %v1342_v20  ;;  %1721 = vrcp.f32 %v730_v11 }
 0x141   : > { %v1704_v28 = vpop.eup %1703  ;;  %v849_v24 = vmul.f32 %v1702_v15, %v1306_v40  ;;  %1723 = vrcp.f32 %v746_v55 }
 0x142   : > { %v1706_v25 = vpop.eup %1705  ;;  %v899_v31 = vadd.f32 %v1342_v20, %v867_v27  ;;  %v865_v32 = vmul.f32 %v1704_v28, %v1338_v57  ;;  %1725 = vpow2.f32 %v676_v16  ;;  %v1452_v28 = vld [vmem:[%s1880_s4 + $0x70] sm:$0xff]  }
 0x143   : > { %v1708_v30 = vpop.eup %1707  ;;  %v881_v36 = vadd.f32 %v1306_v40, %v849_v24  ;;  %v854_v37 = vmul.f32 %v1706_v25, %v1317_v48  ;;  %1727 = vpow2.f32 %v708_v18 }
 0x144   : > { %v1710_v43 = vpop.eup %1709  ;;  %v1417_v42 = vpack.c.bf16 %v899_v31, %v2005_v33  ;;  %v897_v44 = vadd.f32 %v1338_v57, %v865_v32  ;;  %v870_v45 = vmul.f32 %v1708_v30, %v1349_v21  ;;  %1729 = vpow2.f32 %v682_v19  ;;  %v1444_v19 = vld [vmem:[%s1880_s4 + $0x30] sm:$0xff]  }
 0x145   : > { %v1712_v50 = vpop.eup %1711  ;;  %v1372_v53 = vpack.c.bf16 %v881_v36, %v2012_v38  ;;  %v886_v20 = vadd.f32 %v1317_v48, %v854_v37  ;;  %v852_v22 = vmul.f32 %v1710_v43, %v1313_v8  ;;  %1731 = vpow2.f32 %v714_v29 }
 0x146   : > { %v1714_v33 = vpop.eup %1713  ;;  %1464 = vst [vmem:[%s1983_s7 + $0x58] sm:$0xff] %v1417_v42   ;;  %v1412_v40 = vpack.c.bf16 %v897_v44, %v2019_v39  ;;  %v902_v57 = vadd.f32 %v1349_v21, %v870_v45  ;;  %v868_v58 = vmul.f32 %v1712_v50, %v1345_v47  ;;  %1733 = vpow2.f32 %v678_v34 }
 0x147   : > { %v1716_v38 = vpop.eup %1715  ;;  %1455 = vst [vmem:[%s1983_s7 + $0x10] sm:$0xff] %v1372_v53   ;;  %v884_v7 = vadd.f32 %v1313_v8, %v852_v22  ;;  %v855_v48 = vmul.f32 %v1714_v33, %v1318_v52  ;;  %1735 = vpow2.f32 %v710_v41  ;;  %v1321_v24 = vunpack.c.l.bf16 %v1444_v19 }
 0x148   : > { %v1718_v61 = vpop.eup %1717  ;;  %1463 = vst [vmem:[%s1983_s7 + $0x50] sm:$0xff] %v1412_v40   ;;  %v900_v39 = vadd.f32 %v1345_v47, %v868_v58  ;;  %v871_v21 = vmul.f32 %v1716_v38, %v1350_v13  ;;  %v1326_v29 = vunpack.c.h.bf16 %v2057_v46  ;;  %v1358_v31 = vunpack.c.h.bf16 %v2063_v35 }
 0x149   : > { %v1720_v26 = vpop.eup %1719  ;;  %v887_v56 = vadd.f32 %v1318_v52, %v855_v48  ;;  %v853_v8 = vmul.f32 %v1718_v61, %v1314_v0  ;;  %v1322_v30 = vunpack.c.h.bf16 %v1444_v19  ;;  %v1354_v41 = vunpack.c.h.bf16 %v1452_v28 }
 0x14a   : > { %v1722_v62 = vpop.eup %1721  ;;  %v903_v2 = vadd.f32 %v1350_v13, %v871_v21  ;;  %v869_v9 = vmul.f32 %v1720_v26, %v1346_v4 }
 0x14b   : > { %v1724_v5 = vpop.eup %1723  ;;  %v1387_v59 = vpack.c.bf16 %v887_v56, %v886_v20  ;;  %v885_v47 = vadd.f32 %v1314_v0, %v853_v8  ;;  %v858_v12 = vmul.f32 %v1722_v62, %v1325_v60 }
 0x14c   : > { %v1726_v1 = vpop.eup %1725  ;;  %v1427_v54 = vpack.c.bf16 %v903_v2, %v902_v57  ;;  %v901_v6 = vadd.f32 %v1346_v4, %v869_v9  ;;  %v874_v3 = vmul.f32 %v1724_v5, %v1357_v49  ;;  %v1353_v4 = vunpack.c.l.bf16 %v1452_v28 }
 0x14d   : > { %v1728_v10 = vpop.eup %1727  ;;  %1458 = vst [vmem:[%s1983_s7 + $0x28] sm:$0xff] %v1387_v59   ;;  %v1382_v63 = vpack.c.bf16 %v885_v47, %v884_v7  ;;  %v890_v52 = vadd.f32 %v1325_v60, %v858_v12  ;;  %v728_v11 = vadd.f32 1.0, %v1726_v1 }
 0x14e   : > { %v1730_v16 = vpop.eup %1729  ;;  %1466 = vst [vmem:[%s1983_s7 + $0x68] sm:$0xff] %v1427_v54   ;;  %v1422_v51 = vpack.c.bf16 %v901_v6, %v900_v39  ;;  %v906_v13 = vadd.f32 %v1357_v49, %v874_v3  ;;  %v744_v14 = vadd.f32 1.0, %v1728_v10 }
 0x14f   : > { %v1732_v17 = vpop.eup %1731  ;;  %1457 = vst [vmem:[%s1983_s7 + $0x20] sm:$0xff] %v1382_v63   ;;  %1737 = vrcp.f32 %v728_v11  ;;  %v731_v55 = vadd.f32 1.0, %v1730_v16 }
 0x150   : > { %v1734_v18 = vpop.eup %1733  ;;  %1465 = vst [vmem:[%s1983_s7 + $0x60] sm:$0xff] %v1422_v51   ;;  %1739 = vrcp.f32 %v744_v14  ;;  %v747_v23 = vadd.f32 1.0, %v1732_v17 }
 0x151   : > { %v1736_v15 = vpop.eup %1735  ;;  %1741 = vrcp.f32 %v731_v55  ;;  %v729_v27 = vadd.f32 1.0, %v1734_v18 }
 0x152   : > { %1743 = vrcp.f32 %v747_v23  ;;  %v745_v0 = vadd.f32 1.0, %v1736_v15 }
 0x153   : > { %1745 = vrcp.f32 %v729_v27 }
 0x154   : > { %1747 = vrcp.f32 %v745_v0 }
 0x159   : > { %v1738_v25 = vpop.eup %1737 }
 0x15a   : > { %v1740_v32 = vpop.eup %1739  ;;  %v856_v34 = vmul.f32 %v1738_v25, %v1321_v24 }
 0x15b   : > { %v1742_v36 = vpop.eup %1741  ;;  %v872_v37 = vmul.f32 %v1740_v32, %v1353_v4 }
 0x15c   : > { %v1744_v43 = vpop.eup %1743  ;;  %v888_v42 = vadd.f32 %v1321_v24, %v856_v34  ;;  %v859_v44 = vmul.f32 %v1742_v36, %v1326_v29 }
 0x15d   : > { %v1746_v45 = vpop.eup %1745  ;;  %v904_v50 = vadd.f32 %v1353_v4, %v872_v37  ;;  %v875_v53 = vmul.f32 %v1744_v43, %v1358_v31 }
 0x15e   : > { %v1748_v46 = vpop.eup %1747  ;;  %v891_v20 = vadd.f32 %v1326_v29, %v859_v44  ;;  %v857_v22 = vmul.f32 %v1746_v45, %v1322_v30 }
 0x15f   : > { %v907_v35 = vadd.f32 %v1358_v31, %v875_v53  ;;  %v873_v33 = vmul.f32 %v1748_v46, %v1354_v41 }
 0x160   : > { %v1397_v40 = vpack.c.bf16 %v891_v20, %v890_v52  ;;  %v889_v57 = vadd.f32 %v1322_v30, %v857_v22 }
 0x161   : > { %v1437_v58 = vpack.c.bf16 %v907_v35, %v906_v13  ;;  %v905_v38 = vadd.f32 %v1354_v41, %v873_v33 }
 0x162   : > { %1460 = vst [vmem:[%s1983_s7 + $0x38] sm:$0xff] %v1397_v40   ;;  %v1392_v7 = vpack.c.bf16 %v889_v57, %v888_v42 }
 0x163   : > { %1468 = vst [vmem:[%s1983_s7 + $0x78] sm:$0xff] %v1437_v58   ;;  %v1432_v48 = vpack.c.bf16 %v905_v38, %v904_v50 }
 0x164   : > { %1459 = vst [vmem:[%s1983_s7 + $0x30] sm:$0xff] %v1392_v7  }
 0x165   : > { %1467 = vst [vmem:[%s1983_s7 + $0x70] sm:$0xff] %v1432_v48  }
 0x166 PF: > { %s13_s16 = sadd.s32 1, %s1787_s16   ;;  %s2118_s12 = smov %s1779_s14 }
 0x167   : > { %p10_p7 = scmp.ge.s32.totalorder %s13_s16, 6   ;;  %s2119_s13 = smov %s1783_s15 }
 0x168   : > { %s2120_s14 = smov %s2123_s17  ;;  %s2121_s15 = smov %s2127_s18 }
 0x169   :  { %12 = sbr.rel (!%p10_p7) target bundleno = 3 (0x3), region = 68 }

</bundles_post_ra>
